<compile_context>
chip_gen: v5e
topology: v5e:2x2
jax: 0.10.0
libtpu: 0.0.40
codegen_flags: <defaults>
</compile_context>

<pallas_src>
import math
import jax
import jax.numpy as jnp
from jax.experimental import pallas as pl
from jax.experimental.pallas import tpu as pltpu

# ---------------- small BERT config (synthetic) ----------------
B = 2            # batch
S = 8            # sequence length
H = 32           # hidden size (embedding_dim)
NUM_HEADS = 4
HEAD_DIM = H // NUM_HEADS
INTER = 64       # intermediate (FFN) size
NUM_LAYERS = 2
VOCAB = 50
MAX_POS = 16
TYPE_VOCAB = 2
CODE_LENGTH = 16
LN_EPS = 1e-12   # BERT LayerNorm eps
MASK_FILL = -10000.0
BS = B * S
WIDE = 3 * H + INTER          # 160 : packed [bqkv | bi] per layer
WBIG = 3 * H + H + INTER      # 192 : packed [Wqkv | Wo | Wi] per layer


# ---------------- in-kernel helpers ----------------
def _layernorm(x, gamma, beta):
    # Two independent reductions issued back-to-back (E[x], E[x^2]) so the XLU
    # cross-lane reduces can overlap; var = E[x^2] - E[x]^2.
    mu = jnp.mean(x, axis=-1, keepdims=True)
    ms = jnp.mean(x * x, axis=-1, keepdims=True)
    var = ms - mu * mu
    return (x - mu) * jax.lax.rsqrt(var + LN_EPS) * gamma + beta


def _gelu(x):
    # TODO(synk): HF BertConfig's default "gelu" is the exact erf form; the
    # original-BERT tanh approximation is used here (no erf lowering needed).
    return 0.5 * x * (1.0 + jnp.tanh(0.7978845608028654 * (x + 0.044715 * x * x * x)))


def _dot(a_f32, w_bf16):
    # bf16 MXU operands, f32 accumulation.
    return jnp.dot(a_f32.astype(jnp.bfloat16), w_bf16,
                   preferred_element_type=jnp.float32)


# ---------------- the single fused Pallas kernel ----------------
def textnet_kernel(x_ref, mask_ref, hvec_ref, wvec_ref, wbig_ref, wf_ref, fcw_ref,
                   out_ref):
    hv = hvec_ref[...]                                   # (15, H)  packed f32 vectors
    wv = wvec_ref[...]                                   # (L, 160) packed f32 biases

    # Embedding LayerNorm over the whole (B*S, H) block.
    x = _layernorm(x_ref[...], hv[0:1, :], hv[1:2, :])   # (BS, H) f32

    mask3 = mask_ref[...][:, None, :]                    # (B, 1, S) additive bias
    scale = 1.0 / math.sqrt(HEAD_DIM)

    for l in range(NUM_LAYERS):                          # static, unrolled
        base = 2 + 6 * l
        w_l = wbig_ref[l]                                # (H, 192) bf16: [Wqkv|Wo|Wi]
        w_qkv = w_l[:, :3 * H]
        w_o = w_l[:, 3 * H:4 * H]
        w_i = w_l[:, 4 * H:4 * H + INTER]
        b_qkv = wv[l:l + 1, :3 * H]
        b_i = wv[l:l + 1, 3 * H:3 * H + INTER]

        # ---- self-attention ----
        qkv = _dot(x, w_qkv) + b_qkv                     # (BS, 3H) f32

        heads = []
        for h in range(NUM_HEADS):                       # static, unrolled
            lo = h * HEAD_DIM
            q = qkv[:, lo:lo + HEAD_DIM].reshape(B, S, HEAD_DIM).astype(jnp.bfloat16)
            k = qkv[:, H + lo:H + lo + HEAD_DIM].reshape(B, S, HEAD_DIM).astype(jnp.bfloat16)
            v = qkv[:, 2 * H + lo:2 * H + lo + HEAD_DIM].reshape(B, S, HEAD_DIM).astype(jnp.bfloat16)

            # Explicit bf16 operands -> single-pass MXU matmul, f32 accumulation.
            s = jnp.einsum('bqd,bkd->bqk', q, k,
                           preferred_element_type=jnp.float32) * scale
            s = s + mask3
            s = s - jnp.max(s, axis=-1, keepdims=True)
            p = jnp.exp(s)
            p = p * pl.reciprocal(jnp.sum(p, axis=-1, keepdims=True), approx=True)
            ctx = jnp.einsum('bqk,bkd->bqd', p.astype(jnp.bfloat16), v,
                             preferred_element_type=jnp.float32)   # (B, S, HEAD_DIM)
            heads.append(ctx.reshape(BS, HEAD_DIM))

        # One 32-lane concat (single lane tile) + one K=32 Wo matmul.
        attn = jnp.concatenate(heads, axis=-1)                       # (BS, H)
        attn = _dot(attn, w_o) + hv[base:base + 1, :]                # + bo
        x = _layernorm(x + attn, hv[base + 1:base + 2, :], hv[base + 2:base + 3, :])

        # ---- feed-forward ----
        ffn = _gelu(_dot(x, w_i) + b_i)
        ffn = _dot(ffn, wf_ref[l]) + hv[base + 3:base + 4, :]        # + bf
        x = _layernorm(x + ffn, hv[base + 4:base + 5, :], hv[base + 5:base + 6, :])

    # FC + tanh on all BS rows (lane-dense store, no in-kernel CLS gather);
    # the wrapper slices out the CLS rows.
    fc_b = hv[2 + 6 * NUM_LAYERS:3 + 6 * NUM_LAYERS, :CODE_LENGTH]
    out_ref[...] = jnp.tanh(_dot(x, fcw_ref[...]) + fc_b)


# ---------------- Pallas wrapper (one call, no grid) ----------------
def textnet_forward(params, tokens, segments, input_masks):
    # Embedding lookups (gathers) — plain JAX glue outside the kernel.
    positions = jnp.arange(S, dtype=jnp.int32)
    emb = (params["word_emb"][tokens]
           + params["pos_emb"][positions][None, :, :]
           + params["type_emb"][segments]).astype(jnp.float32)       # (B, S, H)
    x_flat = emb.reshape(BS, H)

    # Extended attention mask bias: (1 - mask) * -10000, shape (B, S).
    mask_bias = (1.0 - input_masks.astype(jnp.float32)) * MASK_FILL

    vmem = pl.BlockSpec(memory_space=pltpu.MemorySpace.VMEM)
    out_all = pl.pallas_call(
        textnet_kernel,
        out_shape=jax.ShapeDtypeStruct((BS, CODE_LENGTH), jnp.float32),
        in_specs=[vmem] * 7,
        out_specs=vmem,
        cost_estimate=pl.CostEstimate(flops=600_000, transcendentals=4_000,
                                      bytes_accessed=41_000),
    )(x_flat, mask_bias,
      params["h_vecs"], params["wide_vecs"],
      params["w_big"], params["wf"], params["fc_w"])

    # CLS row is row b*S of the flat activation -> slice outside the kernel.
    return out_all.reshape(B, S, CODE_LENGTH)[:, 0, :]


# ---------------- parameter init (deterministic, synthetic) ----------------
def init_params(key):
    keys = iter(jax.random.split(key, 16))
    nrm = lambda shape: (0.02 * jax.random.normal(next(keys), shape)).astype(jnp.float32)
    L = NUM_LAYERS

    wq, wk, wv = nrm((L, H, H)), nrm((L, H, H)), nrm((L, H, H))
    wqkv = jnp.concatenate([wq, wk, wv], axis=-1)                    # (L, H, 3H)
    wo = nrm((L, H, H))
    wi = nrm((L, H, INTER))
    wf = nrm((L, INTER, H))
    fc_w = nrm((H, CODE_LENGTH))

    # Packed bf16 matmul weights: [Wqkv | Wo | Wi] along the last dim.
    w_big = jnp.concatenate([wqkv, wo, wi], axis=-1).astype(jnp.bfloat16)  # (L,H,192)

    # Packed f32 H-wide vectors:
    #   row 0: emb LN gamma, row 1: emb LN beta,
    #   rows 2+6l..7+6l: [bo, ln1_g, ln1_b, bf, ln2_g, ln2_b] for layer l,
    #   row 2+6L: fc bias (padded from CODE_LENGTH to H with zeros).
    ones_h = jnp.ones((H,), jnp.float32)
    zeros_h = jnp.zeros((H,), jnp.float32)
    rows = [ones_h, zeros_h]
    for _ in range(L):
        rows += [zeros_h, ones_h, zeros_h, zeros_h, ones_h, zeros_h]
    rows.append(zeros_h)                                             # fc_b (padded)
    h_vecs = jnp.stack(rows, axis=0)                                 # (3 + 6L, H)

    # Packed f32 wide biases per layer: [bqkv (3H) | bi (INTER)] (zeros, synthetic).
    wide_vecs = jnp.zeros((L, WIDE), jnp.float32)

    return {
        "word_emb": nrm((VOCAB, H)),
        "pos_emb": nrm((MAX_POS, H)),
        "type_emb": nrm((TYPE_VOCAB, H)),
        "h_vecs": h_vecs,
        "wide_vecs": wide_vecs,
        "w_big": w_big,
        "wf": wf.astype(jnp.bfloat16),
        "fc_w": fc_w.astype(jnp.bfloat16),
    }


if __name__ == "__main__":
    key = jax.random.PRNGKey(0)
    pkey, tkey = jax.random.split(key)
    params = init_params(pkey)

    tokens = jax.random.randint(tkey, (B, S), 0, VOCAB, dtype=jnp.int32)
    segments = jnp.concatenate(
        [jnp.zeros((B, S // 2), jnp.int32), jnp.ones((B, S // 2), jnp.int32)], axis=1)
    input_masks = jnp.array([[1] * S,
                             [1] * (S - 2) + [0] * 2], dtype=jnp.int32)

    fwd = jax.jit(textnet_forward)
    features = jax.block_until_ready(fwd(params, tokens, segments, input_masks))
    assert features.shape == (B, CODE_LENGTH)
    assert bool(jnp.all(jnp.isfinite(features)))
    print("KERNEL_OK")
</pallas_src>

<mosaic_0001>
module attributes {stable_mosaic.version = 11 : i64} {
  func.func @textnet_kernel(%arg0: memref<16x32xf32, #tpu.memory_space<vmem>>, %arg1: memref<2x8xf32, #tpu.memory_space<vmem>>, %arg2: memref<15x32xf32, #tpu.memory_space<vmem>>, %arg3: memref<2x160xf32, #tpu.memory_space<vmem>>, %arg4: memref<2x32x192xbf16, #tpu.memory_space<vmem>>, %arg5: memref<2x64x32xbf16, #tpu.memory_space<vmem>>, %arg6: memref<32x16xbf16, #tpu.memory_space<vmem>>, %arg7: memref<16x16xf32, #tpu.memory_space<vmem>>) attributes {dimension_semantics = [], scalar_prefetch = 0 : i64, scratch_operands = 0 : i64, tpu.core_type = #tpu.core_type<tc>} {
    %c0 = arith.constant 0 : index
    %c0_0 = arith.constant 0 : index
    %0 = vector.load %arg2[%c0, %c0_0] : memref<15x32xf32, #tpu.memory_space<vmem>>, vector<15x32xf32>
    %c0_1 = arith.constant 0 : index
    %c0_2 = arith.constant 0 : index
    %1 = vector.load %arg3[%c0_1, %c0_2] : memref<2x160xf32, #tpu.memory_space<vmem>>, vector<2x160xf32>
    %c0_3 = arith.constant 0 : index
    %c0_4 = arith.constant 0 : index
    %2 = vector.load %arg0[%c0_3, %c0_4] : memref<16x32xf32, #tpu.memory_space<vmem>>, vector<16x32xf32>
    %3 = vector.extract_strided_slice %0 {offsets = [0, 0], sizes = [1, 32], strides = [1, 1]} : vector<15x32xf32> to vector<1x32xf32>
    %4 = vector.extract_strided_slice %0 {offsets = [1, 0], sizes = [1, 32], strides = [1, 1]} : vector<15x32xf32> to vector<1x32xf32>
    %cst = arith.constant dense<0.000000e+00> : vector<16xf32>
    %5 = vector.multi_reduction <add>, %2, %cst [1] : vector<16x32xf32> to vector<16xf32>
    %6 = vector.shape_cast %5 : vector<16xf32> to vector<16x1xf32>
    %cst_5 = arith.constant 3.200000e+01 : f32
    %7 = vector.broadcast %cst_5 : f32 to vector<16x1xf32>
    %8 = arith.divf %6, %7 : vector<16x1xf32>
    %9 = arith.mulf %2, %2 : vector<16x32xf32>
    %cst_6 = arith.constant dense<0.000000e+00> : vector<16xf32>
    %10 = vector.multi_reduction <add>, %9, %cst_6 [1] : vector<16x32xf32> to vector<16xf32>
    %11 = vector.shape_cast %10 : vector<16xf32> to vector<16x1xf32>
    %cst_7 = arith.constant 3.200000e+01 : f32
    %12 = vector.broadcast %cst_7 : f32 to vector<16x1xf32>
    %13 = arith.divf %11, %12 : vector<16x1xf32>
    %14 = arith.mulf %8, %8 : vector<16x1xf32>
    %15 = arith.subf %13, %14 : vector<16x1xf32>
    %16 = vector.broadcast %8 : vector<16x1xf32> to vector<16x32xf32>
    %17 = arith.subf %2, %16 : vector<16x32xf32>
    %cst_8 = arith.constant 9.99999996E-13 : f32
    %18 = vector.broadcast %cst_8 : f32 to vector<16x1xf32>
    %19 = arith.addf %15, %18 : vector<16x1xf32>
    %20 = math.rsqrt %19 : vector<16x1xf32>
    %21 = vector.broadcast %20 : vector<16x1xf32> to vector<16x32xf32>
    %22 = arith.mulf %17, %21 : vector<16x32xf32>
    %23 = vector.broadcast %3 : vector<1x32xf32> to vector<16x32xf32>
    %24 = arith.mulf %22, %23 : vector<16x32xf32>
    %25 = vector.broadcast %4 : vector<1x32xf32> to vector<16x32xf32>
    %26 = arith.addf %24, %25 : vector<16x32xf32>
    %c0_9 = arith.constant 0 : index
    %c0_10 = arith.constant 0 : index
    %27 = vector.load %arg1[%c0_9, %c0_10] : memref<2x8xf32, #tpu.memory_space<vmem>>, vector<2x8xf32>
    %28 = vector.shape_cast %27 : vector<2x8xf32> to vector<2x1x8xf32>
    %c0_11 = arith.constant 0 : index
    %c0_12 = arith.constant 0 : index
    %c0_13 = arith.constant 0 : index
    %29 = vector.load %arg4[%c0_11, %c0_12, %c0_13] : memref<2x32x192xbf16, #tpu.memory_space<vmem>>, vector<1x32x192xbf16>
    %30 = vector.shape_cast %29 : vector<1x32x192xbf16> to vector<32x192xbf16>
    %31 = vector.extract_strided_slice %30 {offsets = [0, 0], sizes = [32, 96], strides = [1, 1]} : vector<32x192xbf16> to vector<32x96xbf16>
    %32 = vector.extract_strided_slice %30 {offsets = [0, 96], sizes = [32, 32], strides = [1, 1]} : vector<32x192xbf16> to vector<32x32xbf16>
    %33 = vector.extract_strided_slice %30 {offsets = [0, 128], sizes = [32, 64], strides = [1, 1]} : vector<32x192xbf16> to vector<32x64xbf16>
    %34 = vector.extract_strided_slice %1 {offsets = [0, 0], sizes = [1, 96], strides = [1, 1]} : vector<2x160xf32> to vector<1x96xf32>
    %35 = vector.extract_strided_slice %1 {offsets = [0, 96], sizes = [1, 64], strides = [1, 1]} : vector<2x160xf32> to vector<1x64xf32>
    %36 = arith.truncf %26 : vector<16x32xf32> to vector<16x32xbf16>
    %cst_14 = arith.constant dense<0.000000e+00> : vector<16x96xf32>
    %37 = tpu.matmul %36, %31, %cst_14 {dimension_numbers = #tpu.dot_dimension_numbers<[1], [0], [0], [1], [0, 0, 1, 1], [], []>} : vector<16x32xbf16>, vector<32x96xbf16>, vector<16x96xf32> -> vector<16x96xf32>
    %38 = vector.broadcast %34 : vector<1x96xf32> to vector<16x96xf32>
    %39 = arith.addf %37, %38 : vector<16x96xf32>
    %40 = vector.extract_strided_slice %39 {offsets = [0, 0], sizes = [16, 8], strides = [1, 1]} : vector<16x96xf32> to vector<16x8xf32>
    %41 = vector.shape_cast %40 : vector<16x8xf32> to vector<2x8x8xf32>
    %42 = arith.truncf %41 : vector<2x8x8xf32> to vector<2x8x8xbf16>
    %43 = vector.extract_strided_slice %39 {offsets = [0, 32], sizes = [16, 8], strides = [1, 1]} : vector<16x96xf32> to vector<16x8xf32>
    %44 = vector.shape_cast %43 : vector<16x8xf32> to vector<2x8x8xf32>
    %45 = arith.truncf %44 : vector<2x8x8xf32> to vector<2x8x8xbf16>
    %46 = vector.extract_strided_slice %39 {offsets = [0, 64], sizes = [16, 8], strides = [1, 1]} : vector<16x96xf32> to vector<16x8xf32>
    %47 = vector.shape_cast %46 : vector<16x8xf32> to vector<2x8x8xf32>
    %48 = arith.truncf %47 : vector<2x8x8xf32> to vector<2x8x8xbf16>
    "tpu.trace_start"() <{level = 10 : i32, message = "bqd,bkd->bqk"}> : () -> ()
    %cst_15 = arith.constant dense<0.000000e+00> : vector<2x8x8xf32>
    %49 = tpu.matmul %42, %45, %cst_15 {dimension_numbers = #tpu.dot_dimension_numbers<[2], [2], [1], [1], [0, 0, 0, 1, 1, 1], [0], [0]>} : vector<2x8x8xbf16>, vector<2x8x8xbf16>, vector<2x8x8xf32> -> vector<2x8x8xf32>
    "tpu.trace_stop"() : () -> ()
    %cst_16 = arith.constant 0.353553385 : f32
    %50 = vector.broadcast %cst_16 : f32 to vector<2x8x8xf32>
    %51 = arith.mulf %49, %50 : vector<2x8x8xf32>
    %52 = vector.broadcast %28 : vector<2x1x8xf32> to vector<2x8x8xf32>
    %53 = arith.addf %51, %52 : vector<2x8x8xf32>
    %cst_17 = arith.constant dense<0xFF800000> : vector<2x8xf32>
    %54 = vector.multi_reduction <maximumf>, %53, %cst_17 [2] : vector<2x8x8xf32> to vector<2x8xf32>
    %55 = vector.shape_cast %54 : vector<2x8xf32> to vector<2x8x1xf32>
    %56 = vector.broadcast %55 : vector<2x8x1xf32> to vector<2x8x8xf32>
    %57 = arith.subf %53, %56 : vector<2x8x8xf32>
    %58 = math.exp %57 : vector<2x8x8xf32>
    %cst_18 = arith.constant dense<0.000000e+00> : vector<2x8xf32>
    %59 = vector.multi_reduction <add>, %58, %cst_18 [2] : vector<2x8x8xf32> to vector<2x8xf32>
    %60 = vector.shape_cast %59 : vector<2x8xf32> to vector<2x8x1xf32>
    %61 = tpu.reciprocal %60 {approx = true} : vector<2x8x1xf32> -> vector<2x8x1xf32>
    %62 = vector.broadcast %61 : vector<2x8x1xf32> to vector<2x8x8xf32>
    %63 = arith.mulf %58, %62 : vector<2x8x8xf32>
    %64 = arith.truncf %63 : vector<2x8x8xf32> to vector<2x8x8xbf16>
    "tpu.trace_start"() <{level = 10 : i32, message = "bqk,bkd->bqd"}> : () -> ()
    %cst_19 = arith.constant dense<0.000000e+00> : vector<2x8x8xf32>
    %65 = tpu.matmul %64, %48, %cst_19 {dimension_numbers = #tpu.dot_dimension_numbers<[2], [1], [1], [2], [0, 0, 0, 1, 1, 2], [0], [0]>} : vector<2x8x8xbf16>, vector<2x8x8xbf16>, vector<2x8x8xf32> -> vector<2x8x8xf32>
    "tpu.trace_stop"() : () -> ()
    %66 = vector.shape_cast %65 : vector<2x8x8xf32> to vector<16x8xf32>
    %67 = vector.extract_strided_slice %39 {offsets = [0, 8], sizes = [16, 8], strides = [1, 1]} : vector<16x96xf32> to vector<16x8xf32>
    %68 = vector.shape_cast %67 : vector<16x8xf32> to vector<2x8x8xf32>
    %69 = arith.truncf %68 : vector<2x8x8xf32> to vector<2x8x8xbf16>
    %70 = vector.extract_strided_slice %39 {offsets = [0, 40], sizes = [16, 8], strides = [1, 1]} : vector<16x96xf32> to vector<16x8xf32>
    %71 = vector.shape_cast %70 : vector<16x8xf32> to vector<2x8x8xf32>
    %72 = arith.truncf %71 : vector<2x8x8xf32> to vector<2x8x8xbf16>
    %73 = vector.extract_strided_slice %39 {offsets = [0, 72], sizes = [16, 8], strides = [1, 1]} : vector<16x96xf32> to vector<16x8xf32>
    %74 = vector.shape_cast %73 : vector<16x8xf32> to vector<2x8x8xf32>
    %75 = arith.truncf %74 : vector<2x8x8xf32> to vector<2x8x8xbf16>
    "tpu.trace_start"() <{level = 10 : i32, message = "bqd,bkd->bqk"}> : () -> ()
    %cst_20 = arith.constant dense<0.000000e+00> : vector<2x8x8xf32>
    %76 = tpu.matmul %69, %72, %cst_20 {dimension_numbers = #tpu.dot_dimension_numbers<[2], [2], [1], [1], [0, 0, 0, 1, 1, 1], [0], [0]>} : vector<2x8x8xbf16>, vector<2x8x8xbf16>, vector<2x8x8xf32> -> vector<2x8x8xf32>
    "tpu.trace_stop"() : () -> ()
    %cst_21 = arith.constant 0.353553385 : f32
    %77 = vector.broadcast %cst_21 : f32 to vector<2x8x8xf32>
    %78 = arith.mulf %76, %77 : vector<2x8x8xf32>
    %79 = vector.broadcast %28 : vector<2x1x8xf32> to vector<2x8x8xf32>
    %80 = arith.addf %78, %79 : vector<2x8x8xf32>
    %cst_22 = arith.constant dense<0xFF800000> : vector<2x8xf32>
    %81 = vector.multi_reduction <maximumf>, %80, %cst_22 [2] : vector<2x8x8xf32> to vector<2x8xf32>
    %82 = vector.shape_cast %81 : vector<2x8xf32> to vector<2x8x1xf32>
    %83 = vector.broadcast %82 : vector<2x8x1xf32> to vector<2x8x8xf32>
    %84 = arith.subf %80, %83 : vector<2x8x8xf32>
    %85 = math.exp %84 : vector<2x8x8xf32>
    %cst_23 = arith.constant dense<0.000000e+00> : vector<2x8xf32>
    %86 = vector.multi_reduction <add>, %85, %cst_23 [2] : vector<2x8x8xf32> to vector<2x8xf32>
    %87 = vector.shape_cast %86 : vector<2x8xf32> to vector<2x8x1xf32>
    %88 = tpu.reciprocal %87 {approx = true} : vector<2x8x1xf32> -> vector<2x8x1xf32>
    %89 = vector.broadcast %88 : vector<2x8x1xf32> to vector<2x8x8xf32>
    %90 = arith.mulf %85, %89 : vector<2x8x8xf32>
    %91 = arith.truncf %90 : vector<2x8x8xf32> to vector<2x8x8xbf16>
    "tpu.trace_start"() <{level = 10 : i32, message = "bqk,bkd->bqd"}> : () -> ()
    %cst_24 = arith.constant dense<0.000000e+00> : vector<2x8x8xf32>
    %92 = tpu.matmul %91, %75, %cst_24 {dimension_numbers = #tpu.dot_dimension_numbers<[2], [1], [1], [2], [0, 0, 0, 1, 1, 2], [0], [0]>} : vector<2x8x8xbf16>, vector<2x8x8xbf16>, vector<2x8x8xf32> -> vector<2x8x8xf32>
    "tpu.trace_stop"() : () -> ()
    %93 = vector.shape_cast %92 : vector<2x8x8xf32> to vector<16x8xf32>
    %94 = vector.extract_strided_slice %39 {offsets = [0, 16], sizes = [16, 8], strides = [1, 1]} : vector<16x96xf32> to vector<16x8xf32>
    %95 = vector.shape_cast %94 : vector<16x8xf32> to vector<2x8x8xf32>
    %96 = arith.truncf %95 : vector<2x8x8xf32> to vector<2x8x8xbf16>
    %97 = vector.extract_strided_slice %39 {offsets = [0, 48], sizes = [16, 8], strides = [1, 1]} : vector<16x96xf32> to vector<16x8xf32>
    %98 = vector.shape_cast %97 : vector<16x8xf32> to vector<2x8x8xf32>
    %99 = arith.truncf %98 : vector<2x8x8xf32> to vector<2x8x8xbf16>
    %100 = vector.extract_strided_slice %39 {offsets = [0, 80], sizes = [16, 8], strides = [1, 1]} : vector<16x96xf32> to vector<16x8xf32>
    %101 = vector.shape_cast %100 : vector<16x8xf32> to vector<2x8x8xf32>
    %102 = arith.truncf %101 : vector<2x8x8xf32> to vector<2x8x8xbf16>
    "tpu.trace_start"() <{level = 10 : i32, message = "bqd,bkd->bqk"}> : () -> ()
    %cst_25 = arith.constant dense<0.000000e+00> : vector<2x8x8xf32>
    %103 = tpu.matmul %96, %99, %cst_25 {dimension_numbers = #tpu.dot_dimension_numbers<[2], [2], [1], [1], [0, 0, 0, 1, 1, 1], [0], [0]>} : vector<2x8x8xbf16>, vector<2x8x8xbf16>, vector<2x8x8xf32> -> vector<2x8x8xf32>
    "tpu.trace_stop"() : () -> ()
    %cst_26 = arith.constant 0.353553385 : f32
    %104 = vector.broadcast %cst_26 : f32 to vector<2x8x8xf32>
    %105 = arith.mulf %103, %104 : vector<2x8x8xf32>
    %106 = vector.broadcast %28 : vector<2x1x8xf32> to vector<2x8x8xf32>
    %107 = arith.addf %105, %106 : vector<2x8x8xf32>
    %cst_27 = arith.constant dense<0xFF800000> : vector<2x8xf32>
    %108 = vector.multi_reduction <maximumf>, %107, %cst_27 [2] : vector<2x8x8xf32> to vector<2x8xf32>
    %109 = vector.shape_cast %108 : vector<2x8xf32> to vector<2x8x1xf32>
    %110 = vector.broadcast %109 : vector<2x8x1xf32> to vector<2x8x8xf32>
    %111 = arith.subf %107, %110 : vector<2x8x8xf32>
    %112 = math.exp %111 : vector<2x8x8xf32>
    %cst_28 = arith.constant dense<0.000000e+00> : vector<2x8xf32>
    %113 = vector.multi_reduction <add>, %112, %cst_28 [2] : vector<2x8x8xf32> to vector<2x8xf32>
    %114 = vector.shape_cast %113 : vector<2x8xf32> to vector<2x8x1xf32>
    %115 = tpu.reciprocal %114 {approx = true} : vector<2x8x1xf32> -> vector<2x8x1xf32>
    %116 = vector.broadcast %115 : vector<2x8x1xf32> to vector<2x8x8xf32>
    %117 = arith.mulf %112, %116 : vector<2x8x8xf32>
    %118 = arith.truncf %117 : vector<2x8x8xf32> to vector<2x8x8xbf16>
    "tpu.trace_start"() <{level = 10 : i32, message = "bqk,bkd->bqd"}> : () -> ()
    %cst_29 = arith.constant dense<0.000000e+00> : vector<2x8x8xf32>
    %119 = tpu.matmul %118, %102, %cst_29 {dimension_numbers = #tpu.dot_dimension_numbers<[2], [1], [1], [2], [0, 0, 0, 1, 1, 2], [0], [0]>} : vector<2x8x8xbf16>, vector<2x8x8xbf16>, vector<2x8x8xf32> -> vector<2x8x8xf32>
    "tpu.trace_stop"() : () -> ()
    %120 = vector.shape_cast %119 : vector<2x8x8xf32> to vector<16x8xf32>
    %121 = vector.extract_strided_slice %39 {offsets = [0, 24], sizes = [16, 8], strides = [1, 1]} : vector<16x96xf32> to vector<16x8xf32>
    %122 = vector.shape_cast %121 : vector<16x8xf32> to vector<2x8x8xf32>
    %123 = arith.truncf %122 : vector<2x8x8xf32> to vector<2x8x8xbf16>
    %124 = vector.extract_strided_slice %39 {offsets = [0, 56], sizes = [16, 8], strides = [1, 1]} : vector<16x96xf32> to vector<16x8xf32>
    %125 = vector.shape_cast %124 : vector<16x8xf32> to vector<2x8x8xf32>
    %126 = arith.truncf %125 : vector<2x8x8xf32> to vector<2x8x8xbf16>
    %127 = vector.extract_strided_slice %39 {offsets = [0, 88], sizes = [16, 8], strides = [1, 1]} : vector<16x96xf32> to vector<16x8xf32>
    %128 = vector.shape_cast %127 : vector<16x8xf32> to vector<2x8x8xf32>
    %129 = arith.truncf %128 : vector<2x8x8xf32> to vector<2x8x8xbf16>
    "tpu.trace_start"() <{level = 10 : i32, message = "bqd,bkd->bqk"}> : () -> ()
    %cst_30 = arith.constant dense<0.000000e+00> : vector<2x8x8xf32>
    %130 = tpu.matmul %123, %126, %cst_30 {dimension_numbers = #tpu.dot_dimension_numbers<[2], [2], [1], [1], [0, 0, 0, 1, 1, 1], [0], [0]>} : vector<2x8x8xbf16>, vector<2x8x8xbf16>, vector<2x8x8xf32> -> vector<2x8x8xf32>
    "tpu.trace_stop"() : () -> ()
    %cst_31 = arith.constant 0.353553385 : f32
    %131 = vector.broadcast %cst_31 : f32 to vector<2x8x8xf32>
    %132 = arith.mulf %130, %131 : vector<2x8x8xf32>
    %133 = vector.broadcast %28 : vector<2x1x8xf32> to vector<2x8x8xf32>
    %134 = arith.addf %132, %133 : vector<2x8x8xf32>
    %cst_32 = arith.constant dense<0xFF800000> : vector<2x8xf32>
    %135 = vector.multi_reduction <maximumf>, %134, %cst_32 [2] : vector<2x8x8xf32> to vector<2x8xf32>
    %136 = vector.shape_cast %135 : vector<2x8xf32> to vector<2x8x1xf32>
    %137 = vector.broadcast %136 : vector<2x8x1xf32> to vector<2x8x8xf32>
    %138 = arith.subf %134, %137 : vector<2x8x8xf32>
    %139 = math.exp %138 : vector<2x8x8xf32>
    %cst_33 = arith.constant dense<0.000000e+00> : vector<2x8xf32>
    %140 = vector.multi_reduction <add>, %139, %cst_33 [2] : vector<2x8x8xf32> to vector<2x8xf32>
    %141 = vector.shape_cast %140 : vector<2x8xf32> to vector<2x8x1xf32>
    %142 = tpu.reciprocal %141 {approx = true} : vector<2x8x1xf32> -> vector<2x8x1xf32>
    %143 = vector.broadcast %142 : vector<2x8x1xf32> to vector<2x8x8xf32>
    %144 = arith.mulf %139, %143 : vector<2x8x8xf32>
    %145 = arith.truncf %144 : vector<2x8x8xf32> to vector<2x8x8xbf16>
    "tpu.trace_start"() <{level = 10 : i32, message = "bqk,bkd->bqd"}> : () -> ()
    %cst_34 = arith.constant dense<0.000000e+00> : vector<2x8x8xf32>
    %146 = tpu.matmul %145, %129, %cst_34 {dimension_numbers = #tpu.dot_dimension_numbers<[2], [1], [1], [2], [0, 0, 0, 1, 1, 2], [0], [0]>} : vector<2x8x8xbf16>, vector<2x8x8xbf16>, vector<2x8x8xf32> -> vector<2x8x8xf32>
    "tpu.trace_stop"() : () -> ()
    %147 = vector.shape_cast %146 : vector<2x8x8xf32> to vector<16x8xf32>
    %148 = tpu.concatenate %66, %93, %120, %147 in 1 : vector<16x8xf32>, vector<16x8xf32>, vector<16x8xf32>, vector<16x8xf32> -> vector<16x32xf32>
    %149 = arith.truncf %148 : vector<16x32xf32> to vector<16x32xbf16>
    %cst_35 = arith.constant dense<0.000000e+00> : vector<16x32xf32>
    %150 = tpu.matmul %149, %32, %cst_35 {dimension_numbers = #tpu.dot_dimension_numbers<[1], [0], [0], [1], [0, 0, 1, 1], [], []>} : vector<16x32xbf16>, vector<32x32xbf16>, vector<16x32xf32> -> vector<16x32xf32>
    %151 = vector.extract_strided_slice %0 {offsets = [2, 0], sizes = [1, 32], strides = [1, 1]} : vector<15x32xf32> to vector<1x32xf32>
    %152 = vector.broadcast %151 : vector<1x32xf32> to vector<16x32xf32>
    %153 = arith.addf %150, %152 : vector<16x32xf32>
    %154 = arith.addf %26, %153 : vector<16x32xf32>
    %155 = vector.extract_strided_slice %0 {offsets = [3, 0], sizes = [1, 32], strides = [1, 1]} : vector<15x32xf32> to vector<1x32xf32>
    %156 = vector.extract_strided_slice %0 {offsets = [4, 0], sizes = [1, 32], strides = [1, 1]} : vector<15x32xf32> to vector<1x32xf32>
    %cst_36 = arith.constant dense<0.000000e+00> : vector<16xf32>
    %157 = vector.multi_reduction <add>, %154, %cst_36 [1] : vector<16x32xf32> to vector<16xf32>
    %158 = vector.shape_cast %157 : vector<16xf32> to vector<16x1xf32>
    %cst_37 = arith.constant 3.200000e+01 : f32
    %159 = vector.broadcast %cst_37 : f32 to vector<16x1xf32>
    %160 = arith.divf %158, %159 : vector<16x1xf32>
    %161 = arith.mulf %154, %154 : vector<16x32xf32>
    %cst_38 = arith.constant dense<0.000000e+00> : vector<16xf32>
    %162 = vector.multi_reduction <add>, %161, %cst_38 [1] : vector<16x32xf32> to vector<16xf32>
    %163 = vector.shape_cast %162 : vector<16xf32> to vector<16x1xf32>
    %cst_39 = arith.constant 3.200000e+01 : f32
    %164 = vector.broadcast %cst_39 : f32 to vector<16x1xf32>
    %165 = arith.divf %163, %164 : vector<16x1xf32>
    %166 = arith.mulf %160, %160 : vector<16x1xf32>
    %167 = arith.subf %165, %166 : vector<16x1xf32>
    %168 = vector.broadcast %160 : vector<16x1xf32> to vector<16x32xf32>
    %169 = arith.subf %154, %168 : vector<16x32xf32>
    %cst_40 = arith.constant 9.99999996E-13 : f32
    %170 = vector.broadcast %cst_40 : f32 to vector<16x1xf32>
    %171 = arith.addf %167, %170 : vector<16x1xf32>
    %172 = math.rsqrt %171 : vector<16x1xf32>
    %173 = vector.broadcast %172 : vector<16x1xf32> to vector<16x32xf32>
    %174 = arith.mulf %169, %173 : vector<16x32xf32>
    %175 = vector.broadcast %155 : vector<1x32xf32> to vector<16x32xf32>
    %176 = arith.mulf %174, %175 : vector<16x32xf32>
    %177 = vector.broadcast %156 : vector<1x32xf32> to vector<16x32xf32>
    %178 = arith.addf %176, %177 : vector<16x32xf32>
    %179 = arith.truncf %178 : vector<16x32xf32> to vector<16x32xbf16>
    %cst_41 = arith.constant dense<0.000000e+00> : vector<16x64xf32>
    %180 = tpu.matmul %179, %33, %cst_41 {dimension_numbers = #tpu.dot_dimension_numbers<[1], [0], [0], [1], [0, 0, 1, 1], [], []>} : vector<16x32xbf16>, vector<32x64xbf16>, vector<16x64xf32> -> vector<16x64xf32>
    %181 = vector.broadcast %35 : vector<1x64xf32> to vector<16x64xf32>
    %182 = arith.addf %180, %181 : vector<16x64xf32>
    %cst_42 = arith.constant 5.000000e-01 : f32
    %183 = vector.broadcast %cst_42 : f32 to vector<16x64xf32>
    %184 = arith.mulf %183, %182 : vector<16x64xf32>
    %cst_43 = arith.constant 4.471500e-02 : f32
    %185 = vector.broadcast %cst_43 : f32 to vector<16x64xf32>
    %186 = arith.mulf %185, %182 : vector<16x64xf32>
    %187 = arith.mulf %186, %182 : vector<16x64xf32>
    %188 = arith.mulf %187, %182 : vector<16x64xf32>
    %189 = arith.addf %182, %188 : vector<16x64xf32>
    %cst_44 = arith.constant 0.797884583 : f32
    %190 = vector.broadcast %cst_44 : f32 to vector<16x64xf32>
    %191 = arith.mulf %190, %189 : vector<16x64xf32>
    %192 = math.tanh %191 : vector<16x64xf32>
    %cst_45 = arith.constant 1.000000e+00 : f32
    %193 = vector.broadcast %cst_45 : f32 to vector<16x64xf32>
    %194 = arith.addf %193, %192 : vector<16x64xf32>
    %195 = arith.mulf %184, %194 : vector<16x64xf32>
    %c0_46 = arith.constant 0 : index
    %c0_47 = arith.constant 0 : index
    %c0_48 = arith.constant 0 : index
    %196 = vector.load %arg5[%c0_46, %c0_47, %c0_48] : memref<2x64x32xbf16, #tpu.memory_space<vmem>>, vector<1x64x32xbf16>
    %197 = vector.shape_cast %196 : vector<1x64x32xbf16> to vector<64x32xbf16>
    %198 = arith.truncf %195 : vector<16x64xf32> to vector<16x64xbf16>
    %cst_49 = arith.constant dense<0.000000e+00> : vector<16x32xf32>
    %199 = tpu.matmul %198, %197, %cst_49 {dimension_numbers = #tpu.dot_dimension_numbers<[1], [0], [0], [1], [0, 0, 1, 1], [], []>} : vector<16x64xbf16>, vector<64x32xbf16>, vector<16x32xf32> -> vector<16x32xf32>
    %200 = vector.extract_strided_slice %0 {offsets = [5, 0], sizes = [1, 32], strides = [1, 1]} : vector<15x32xf32> to vector<1x32xf32>
    %201 = vector.broadcast %200 : vector<1x32xf32> to vector<16x32xf32>
    %202 = arith.addf %199, %201 : vector<16x32xf32>
    %203 = arith.addf %178, %202 : vector<16x32xf32>
    %204 = vector.extract_strided_slice %0 {offsets = [6, 0], sizes = [1, 32], strides = [1, 1]} : vector<15x32xf32> to vector<1x32xf32>
    %205 = vector.extract_strided_slice %0 {offsets = [7, 0], sizes = [1, 32], strides = [1, 1]} : vector<15x32xf32> to vector<1x32xf32>
    %cst_50 = arith.constant dense<0.000000e+00> : vector<16xf32>
    %206 = vector.multi_reduction <add>, %203, %cst_50 [1] : vector<16x32xf32> to vector<16xf32>
    %207 = vector.shape_cast %206 : vector<16xf32> to vector<16x1xf32>
    %cst_51 = arith.constant 3.200000e+01 : f32
    %208 = vector.broadcast %cst_51 : f32 to vector<16x1xf32>
    %209 = arith.divf %207, %208 : vector<16x1xf32>
    %210 = arith.mulf %203, %203 : vector<16x32xf32>
    %cst_52 = arith.constant dense<0.000000e+00> : vector<16xf32>
    %211 = vector.multi_reduction <add>, %210, %cst_52 [1] : vector<16x32xf32> to vector<16xf32>
    %212 = vector.shape_cast %211 : vector<16xf32> to vector<16x1xf32>
    %cst_53 = arith.constant 3.200000e+01 : f32
    %213 = vector.broadcast %cst_53 : f32 to vector<16x1xf32>
    %214 = arith.divf %212, %213 : vector<16x1xf32>
    %215 = arith.mulf %209, %209 : vector<16x1xf32>
    %216 = arith.subf %214, %215 : vector<16x1xf32>
    %217 = vector.broadcast %209 : vector<16x1xf32> to vector<16x32xf32>
    %218 = arith.subf %203, %217 : vector<16x32xf32>
    %cst_54 = arith.constant 9.99999996E-13 : f32
    %219 = vector.broadcast %cst_54 : f32 to vector<16x1xf32>
    %220 = arith.addf %216, %219 : vector<16x1xf32>
    %221 = math.rsqrt %220 : vector<16x1xf32>
    %222 = vector.broadcast %221 : vector<16x1xf32> to vector<16x32xf32>
    %223 = arith.mulf %218, %222 : vector<16x32xf32>
    %224 = vector.broadcast %204 : vector<1x32xf32> to vector<16x32xf32>
    %225 = arith.mulf %223, %224 : vector<16x32xf32>
    %226 = vector.broadcast %205 : vector<1x32xf32> to vector<16x32xf32>
    %227 = arith.addf %225, %226 : vector<16x32xf32>
    %c1 = arith.constant 1 : index
    %c0_55 = arith.constant 0 : index
    %c0_56 = arith.constant 0 : index
    %228 = vector.load %arg4[%c1, %c0_55, %c0_56] : memref<2x32x192xbf16, #tpu.memory_space<vmem>>, vector<1x32x192xbf16>
    %229 = vector.shape_cast %228 : vector<1x32x192xbf16> to vector<32x192xbf16>
    %230 = vector.extract_strided_slice %229 {offsets = [0, 0], sizes = [32, 96], strides = [1, 1]} : vector<32x192xbf16> to vector<32x96xbf16>
    %231 = vector.extract_strided_slice %229 {offsets = [0, 96], sizes = [32, 32], strides = [1, 1]} : vector<32x192xbf16> to vector<32x32xbf16>
    %232 = vector.extract_strided_slice %229 {offsets = [0, 128], sizes = [32, 64], strides = [1, 1]} : vector<32x192xbf16> to vector<32x64xbf16>
    %233 = vector.extract_strided_slice %1 {offsets = [1, 0], sizes = [1, 96], strides = [1, 1]} : vector<2x160xf32> to vector<1x96xf32>
    %234 = vector.extract_strided_slice %1 {offsets = [1, 96], sizes = [1, 64], strides = [1, 1]} : vector<2x160xf32> to vector<1x64xf32>
    %235 = arith.truncf %227 : vector<16x32xf32> to vector<16x32xbf16>
    %cst_57 = arith.constant dense<0.000000e+00> : vector<16x96xf32>
    %236 = tpu.matmul %235, %230, %cst_57 {dimension_numbers = #tpu.dot_dimension_numbers<[1], [0], [0], [1], [0, 0, 1, 1], [], []>} : vector<16x32xbf16>, vector<32x96xbf16>, vector<16x96xf32> -> vector<16x96xf32>
    %237 = vector.broadcast %233 : vector<1x96xf32> to vector<16x96xf32>
    %238 = arith.addf %236, %237 : vector<16x96xf32>
    %239 = vector.extract_strided_slice %238 {offsets = [0, 0], sizes = [16, 8], strides = [1, 1]} : vector<16x96xf32> to vector<16x8xf32>
    %240 = vector.shape_cast %239 : vector<16x8xf32> to vector<2x8x8xf32>
    %241 = arith.truncf %240 : vector<2x8x8xf32> to vector<2x8x8xbf16>
    %242 = vector.extract_strided_slice %238 {offsets = [0, 32], sizes = [16, 8], strides = [1, 1]} : vector<16x96xf32> to vector<16x8xf32>
    %243 = vector.shape_cast %242 : vector<16x8xf32> to vector<2x8x8xf32>
    %244 = arith.truncf %243 : vector<2x8x8xf32> to vector<2x8x8xbf16>
    %245 = vector.extract_strided_slice %238 {offsets = [0, 64], sizes = [16, 8], strides = [1, 1]} : vector<16x96xf32> to vector<16x8xf32>
    %246 = vector.shape_cast %245 : vector<16x8xf32> to vector<2x8x8xf32>
    %247 = arith.truncf %246 : vector<2x8x8xf32> to vector<2x8x8xbf16>
    "tpu.trace_start"() <{level = 10 : i32, message = "bqd,bkd->bqk"}> : () -> ()
    %cst_58 = arith.constant dense<0.000000e+00> : vector<2x8x8xf32>
    %248 = tpu.matmul %241, %244, %cst_58 {dimension_numbers = #tpu.dot_dimension_numbers<[2], [2], [1], [1], [0, 0, 0, 1, 1, 1], [0], [0]>} : vector<2x8x8xbf16>, vector<2x8x8xbf16>, vector<2x8x8xf32> -> vector<2x8x8xf32>
    "tpu.trace_stop"() : () -> ()
    %cst_59 = arith.constant 0.353553385 : f32
    %249 = vector.broadcast %cst_59 : f32 to vector<2x8x8xf32>
    %250 = arith.mulf %248, %249 : vector<2x8x8xf32>
    %251 = vector.broadcast %28 : vector<2x1x8xf32> to vector<2x8x8xf32>
    %252 = arith.addf %250, %251 : vector<2x8x8xf32>
    %cst_60 = arith.constant dense<0xFF800000> : vector<2x8xf32>
    %253 = vector.multi_reduction <maximumf>, %252, %cst_60 [2] : vector<2x8x8xf32> to vector<2x8xf32>
    %254 = vector.shape_cast %253 : vector<2x8xf32> to vector<2x8x1xf32>
    %255 = vector.broadcast %254 : vector<2x8x1xf32> to vector<2x8x8xf32>
    %256 = arith.subf %252, %255 : vector<2x8x8xf32>
    %257 = math.exp %256 : vector<2x8x8xf32>
    %cst_61 = arith.constant dense<0.000000e+00> : vector<2x8xf32>
    %258 = vector.multi_reduction <add>, %257, %cst_61 [2] : vector<2x8x8xf32> to vector<2x8xf32>
    %259 = vector.shape_cast %258 : vector<2x8xf32> to vector<2x8x1xf32>
    %260 = tpu.reciprocal %259 {approx = true} : vector<2x8x1xf32> -> vector<2x8x1xf32>
    %261 = vector.broadcast %260 : vector<2x8x1xf32> to vector<2x8x8xf32>
    %262 = arith.mulf %257, %261 : vector<2x8x8xf32>
    %263 = arith.truncf %262 : vector<2x8x8xf32> to vector<2x8x8xbf16>
    "tpu.trace_start"() <{level = 10 : i32, message = "bqk,bkd->bqd"}> : () -> ()
    %cst_62 = arith.constant dense<0.000000e+00> : vector<2x8x8xf32>
    %264 = tpu.matmul %263, %247, %cst_62 {dimension_numbers = #tpu.dot_dimension_numbers<[2], [1], [1], [2], [0, 0, 0, 1, 1, 2], [0], [0]>} : vector<2x8x8xbf16>, vector<2x8x8xbf16>, vector<2x8x8xf32> -> vector<2x8x8xf32>
    "tpu.trace_stop"() : () -> ()
    %265 = vector.shape_cast %264 : vector<2x8x8xf32> to vector<16x8xf32>
    %266 = vector.extract_strided_slice %238 {offsets = [0, 8], sizes = [16, 8], strides = [1, 1]} : vector<16x96xf32> to vector<16x8xf32>
    %267 = vector.shape_cast %266 : vector<16x8xf32> to vector<2x8x8xf32>
    %268 = arith.truncf %267 : vector<2x8x8xf32> to vector<2x8x8xbf16>
    %269 = vector.extract_strided_slice %238 {offsets = [0, 40], sizes = [16, 8], strides = [1, 1]} : vector<16x96xf32> to vector<16x8xf32>
    %270 = vector.shape_cast %269 : vector<16x8xf32> to vector<2x8x8xf32>
    %271 = arith.truncf %270 : vector<2x8x8xf32> to vector<2x8x8xbf16>
    %272 = vector.extract_strided_slice %238 {offsets = [0, 72], sizes = [16, 8], strides = [1, 1]} : vector<16x96xf32> to vector<16x8xf32>
    %273 = vector.shape_cast %272 : vector<16x8xf32> to vector<2x8x8xf32>
    %274 = arith.truncf %273 : vector<2x8x8xf32> to vector<2x8x8xbf16>
    "tpu.trace_start"() <{level = 10 : i32, message = "bqd,bkd->bqk"}> : () -> ()
    %cst_63 = arith.constant dense<0.000000e+00> : vector<2x8x8xf32>
    %275 = tpu.matmul %268, %271, %cst_63 {dimension_numbers = #tpu.dot_dimension_numbers<[2], [2], [1], [1], [0, 0, 0, 1, 1, 1], [0], [0]>} : vector<2x8x8xbf16>, vector<2x8x8xbf16>, vector<2x8x8xf32> -> vector<2x8x8xf32>
    "tpu.trace_stop"() : () -> ()
    %cst_64 = arith.constant 0.353553385 : f32
    %276 = vector.broadcast %cst_64 : f32 to vector<2x8x8xf32>
    %277 = arith.mulf %275, %276 : vector<2x8x8xf32>
    %278 = vector.broadcast %28 : vector<2x1x8xf32> to vector<2x8x8xf32>
    %279 = arith.addf %277, %278 : vector<2x8x8xf32>
    %cst_65 = arith.constant dense<0xFF800000> : vector<2x8xf32>
    %280 = vector.multi_reduction <maximumf>, %279, %cst_65 [2] : vector<2x8x8xf32> to vector<2x8xf32>
    %281 = vector.shape_cast %280 : vector<2x8xf32> to vector<2x8x1xf32>
    %282 = vector.broadcast %281 : vector<2x8x1xf32> to vector<2x8x8xf32>
    %283 = arith.subf %279, %282 : vector<2x8x8xf32>
    %284 = math.exp %283 : vector<2x8x8xf32>
    %cst_66 = arith.constant dense<0.000000e+00> : vector<2x8xf32>
    %285 = vector.multi_reduction <add>, %284, %cst_66 [2] : vector<2x8x8xf32> to vector<2x8xf32>
    %286 = vector.shape_cast %285 : vector<2x8xf32> to vector<2x8x1xf32>
    %287 = tpu.reciprocal %286 {approx = true} : vector<2x8x1xf32> -> vector<2x8x1xf32>
    %288 = vector.broadcast %287 : vector<2x8x1xf32> to vector<2x8x8xf32>
    %289 = arith.mulf %284, %288 : vector<2x8x8xf32>
    %290 = arith.truncf %289 : vector<2x8x8xf32> to vector<2x8x8xbf16>
    "tpu.trace_start"() <{level = 10 : i32, message = "bqk,bkd->bqd"}> : () -> ()
    %cst_67 = arith.constant dense<0.000000e+00> : vector<2x8x8xf32>
    %291 = tpu.matmul %290, %274, %cst_67 {dimension_numbers = #tpu.dot_dimension_numbers<[2], [1], [1], [2], [0, 0, 0, 1, 1, 2], [0], [0]>} : vector<2x8x8xbf16>, vector<2x8x8xbf16>, vector<2x8x8xf32> -> vector<2x8x8xf32>
    "tpu.trace_stop"() : () -> ()
    %292 = vector.shape_cast %291 : vector<2x8x8xf32> to vector<16x8xf32>
    %293 = vector.extract_strided_slice %238 {offsets = [0, 16], sizes = [16, 8], strides = [1, 1]} : vector<16x96xf32> to vector<16x8xf32>
    %294 = vector.shape_cast %293 : vector<16x8xf32> to vector<2x8x8xf32>
    %295 = arith.truncf %294 : vector<2x8x8xf32> to vector<2x8x8xbf16>
    %296 = vector.extract_strided_slice %238 {offsets = [0, 48], sizes = [16, 8], strides = [1, 1]} : vector<16x96xf32> to vector<16x8xf32>
    %297 = vector.shape_cast %296 : vector<16x8xf32> to vector<2x8x8xf32>
    %298 = arith.truncf %297 : vector<2x8x8xf32> to vector<2x8x8xbf16>
    %299 = vector.extract_strided_slice %238 {offsets = [0, 80], sizes = [16, 8], strides = [1, 1]} : vector<16x96xf32> to vector<16x8xf32>
    %300 = vector.shape_cast %299 : vector<16x8xf32> to vector<2x8x8xf32>
    %301 = arith.truncf %300 : vector<2x8x8xf32> to vector<2x8x8xbf16>
    "tpu.trace_start"() <{level = 10 : i32, message = "bqd,bkd->bqk"}> : () -> ()
    %cst_68 = arith.constant dense<0.000000e+00> : vector<2x8x8xf32>
    %302 = tpu.matmul %295, %298, %cst_68 {dimension_numbers = #tpu.dot_dimension_numbers<[2], [2], [1], [1], [0, 0, 0, 1, 1, 1], [0], [0]>} : vector<2x8x8xbf16>, vector<2x8x8xbf16>, vector<2x8x8xf32> -> vector<2x8x8xf32>
    "tpu.trace_stop"() : () -> ()
    %cst_69 = arith.constant 0.353553385 : f32
    %303 = vector.broadcast %cst_69 : f32 to vector<2x8x8xf32>
    %304 = arith.mulf %302, %303 : vector<2x8x8xf32>
    %305 = vector.broadcast %28 : vector<2x1x8xf32> to vector<2x8x8xf32>
    %306 = arith.addf %304, %305 : vector<2x8x8xf32>
    %cst_70 = arith.constant dense<0xFF800000> : vector<2x8xf32>
    %307 = vector.multi_reduction <maximumf>, %306, %cst_70 [2] : vector<2x8x8xf32> to vector<2x8xf32>
    %308 = vector.shape_cast %307 : vector<2x8xf32> to vector<2x8x1xf32>
    %309 = vector.broadcast %308 : vector<2x8x1xf32> to vector<2x8x8xf32>
    %310 = arith.subf %306, %309 : vector<2x8x8xf32>
    %311 = math.exp %310 : vector<2x8x8xf32>
    %cst_71 = arith.constant dense<0.000000e+00> : vector<2x8xf32>
    %312 = vector.multi_reduction <add>, %311, %cst_71 [2] : vector<2x8x8xf32> to vector<2x8xf32>
    %313 = vector.shape_cast %312 : vector<2x8xf32> to vector<2x8x1xf32>
    %314 = tpu.reciprocal %313 {approx = true} : vector<2x8x1xf32> -> vector<2x8x1xf32>
    %315 = vector.broadcast %314 : vector<2x8x1xf32> to vector<2x8x8xf32>
    %316 = arith.mulf %311, %315 : vector<2x8x8xf32>
    %317 = arith.truncf %316 : vector<2x8x8xf32> to vector<2x8x8xbf16>
    "tpu.trace_start"() <{level = 10 : i32, message = "bqk,bkd->bqd"}> : () -> ()
    %cst_72 = arith.constant dense<0.000000e+00> : vector<2x8x8xf32>
    %318 = tpu.matmul %317, %301, %cst_72 {dimension_numbers = #tpu.dot_dimension_numbers<[2], [1], [1], [2], [0, 0, 0, 1, 1, 2], [0], [0]>} : vector<2x8x8xbf16>, vector<2x8x8xbf16>, vector<2x8x8xf32> -> vector<2x8x8xf32>
    "tpu.trace_stop"() : () -> ()
    %319 = vector.shape_cast %318 : vector<2x8x8xf32> to vector<16x8xf32>
    %320 = vector.extract_strided_slice %238 {offsets = [0, 24], sizes = [16, 8], strides = [1, 1]} : vector<16x96xf32> to vector<16x8xf32>
    %321 = vector.shape_cast %320 : vector<16x8xf32> to vector<2x8x8xf32>
    %322 = arith.truncf %321 : vector<2x8x8xf32> to vector<2x8x8xbf16>
    %323 = vector.extract_strided_slice %238 {offsets = [0, 56], sizes = [16, 8], strides = [1, 1]} : vector<16x96xf32> to vector<16x8xf32>
    %324 = vector.shape_cast %323 : vector<16x8xf32> to vector<2x8x8xf32>
    %325 = arith.truncf %324 : vector<2x8x8xf32> to vector<2x8x8xbf16>
    %326 = vector.extract_strided_slice %238 {offsets = [0, 88], sizes = [16, 8], strides = [1, 1]} : vector<16x96xf32> to vector<16x8xf32>
    %327 = vector.shape_cast %326 : vector<16x8xf32> to vector<2x8x8xf32>
    %328 = arith.truncf %327 : vector<2x8x8xf32> to vector<2x8x8xbf16>
    "tpu.trace_start"() <{level = 10 : i32, message = "bqd,bkd->bqk"}> : () -> ()
    %cst_73 = arith.constant dense<0.000000e+00> : vector<2x8x8xf32>
    %329 = tpu.matmul %322, %325, %cst_73 {dimension_numbers = #tpu.dot_dimension_numbers<[2], [2], [1], [1], [0, 0, 0, 1, 1, 1], [0], [0]>} : vector<2x8x8xbf16>, vector<2x8x8xbf16>, vector<2x8x8xf32> -> vector<2x8x8xf32>
    "tpu.trace_stop"() : () -> ()
    %cst_74 = arith.constant 0.353553385 : f32
    %330 = vector.broadcast %cst_74 : f32 to vector<2x8x8xf32>
    %331 = arith.mulf %329, %330 : vector<2x8x8xf32>
    %332 = vector.broadcast %28 : vector<2x1x8xf32> to vector<2x8x8xf32>
    %333 = arith.addf %331, %332 : vector<2x8x8xf32>
    %cst_75 = arith.constant dense<0xFF800000> : vector<2x8xf32>
    %334 = vector.multi_reduction <maximumf>, %333, %cst_75 [2] : vector<2x8x8xf32> to vector<2x8xf32>
    %335 = vector.shape_cast %334 : vector<2x8xf32> to vector<2x8x1xf32>
    %336 = vector.broadcast %335 : vector<2x8x1xf32> to vector<2x8x8xf32>
    %337 = arith.subf %333, %336 : vector<2x8x8xf32>
    %338 = math.exp %337 : vector<2x8x8xf32>
    %cst_76 = arith.constant dense<0.000000e+00> : vector<2x8xf32>
    %339 = vector.multi_reduction <add>, %338, %cst_76 [2] : vector<2x8x8xf32> to vector<2x8xf32>
    %340 = vector.shape_cast %339 : vector<2x8xf32> to vector<2x8x1xf32>
    %341 = tpu.reciprocal %340 {approx = true} : vector<2x8x1xf32> -> vector<2x8x1xf32>
    %342 = vector.broadcast %341 : vector<2x8x1xf32> to vector<2x8x8xf32>
    %343 = arith.mulf %338, %342 : vector<2x8x8xf32>
    %344 = arith.truncf %343 : vector<2x8x8xf32> to vector<2x8x8xbf16>
    "tpu.trace_start"() <{level = 10 : i32, message = "bqk,bkd->bqd"}> : () -> ()
    %cst_77 = arith.constant dense<0.000000e+00> : vector<2x8x8xf32>
    %345 = tpu.matmul %344, %328, %cst_77 {dimension_numbers = #tpu.dot_dimension_numbers<[2], [1], [1], [2], [0, 0, 0, 1, 1, 2], [0], [0]>} : vector<2x8x8xbf16>, vector<2x8x8xbf16>, vector<2x8x8xf32> -> vector<2x8x8xf32>
    "tpu.trace_stop"() : () -> ()
    %346 = vector.shape_cast %345 : vector<2x8x8xf32> to vector<16x8xf32>
    %347 = tpu.concatenate %265, %292, %319, %346 in 1 : vector<16x8xf32>, vector<16x8xf32>, vector<16x8xf32>, vector<16x8xf32> -> vector<16x32xf32>
    %348 = arith.truncf %347 : vector<16x32xf32> to vector<16x32xbf16>
    %cst_78 = arith.constant dense<0.000000e+00> : vector<16x32xf32>
    %349 = tpu.matmul %348, %231, %cst_78 {dimension_numbers = #tpu.dot_dimension_numbers<[1], [0], [0], [1], [0, 0, 1, 1], [], []>} : vector<16x32xbf16>, vector<32x32xbf16>, vector<16x32xf32> -> vector<16x32xf32>
    %350 = vector.extract_strided_slice %0 {offsets = [8, 0], sizes = [1, 32], strides = [1, 1]} : vector<15x32xf32> to vector<1x32xf32>
    %351 = vector.broadcast %350 : vector<1x32xf32> to vector<16x32xf32>
    %352 = arith.addf %349, %351 : vector<16x32xf32>
    %353 = arith.addf %227, %352 : vector<16x32xf32>
    %354 = vector.extract_strided_slice %0 {offsets = [9, 0], sizes = [1, 32], strides = [1, 1]} : vector<15x32xf32> to vector<1x32xf32>
    %355 = vector.extract_strided_slice %0 {offsets = [10, 0], sizes = [1, 32], strides = [1, 1]} : vector<15x32xf32> to vector<1x32xf32>
    %cst_79 = arith.constant dense<0.000000e+00> : vector<16xf32>
    %356 = vector.multi_reduction <add>, %353, %cst_79 [1] : vector<16x32xf32> to vector<16xf32>
    %357 = vector.shape_cast %356 : vector<16xf32> to vector<16x1xf32>
    %cst_80 = arith.constant 3.200000e+01 : f32
    %358 = vector.broadcast %cst_80 : f32 to vector<16x1xf32>
    %359 = arith.divf %357, %358 : vector<16x1xf32>
    %360 = arith.mulf %353, %353 : vector<16x32xf32>
    %cst_81 = arith.constant dense<0.000000e+00> : vector<16xf32>
    %361 = vector.multi_reduction <add>, %360, %cst_81 [1] : vector<16x32xf32> to vector<16xf32>
    %362 = vector.shape_cast %361 : vector<16xf32> to vector<16x1xf32>
    %cst_82 = arith.constant 3.200000e+01 : f32
    %363 = vector.broadcast %cst_82 : f32 to vector<16x1xf32>
    %364 = arith.divf %362, %363 : vector<16x1xf32>
    %365 = arith.mulf %359, %359 : vector<16x1xf32>
    %366 = arith.subf %364, %365 : vector<16x1xf32>
    %367 = vector.broadcast %359 : vector<16x1xf32> to vector<16x32xf32>
    %368 = arith.subf %353, %367 : vector<16x32xf32>
    %cst_83 = arith.constant 9.99999996E-13 : f32
    %369 = vector.broadcast %cst_83 : f32 to vector<16x1xf32>
    %370 = arith.addf %366, %369 : vector<16x1xf32>
    %371 = math.rsqrt %370 : vector<16x1xf32>
    %372 = vector.broadcast %371 : vector<16x1xf32> to vector<16x32xf32>
    %373 = arith.mulf %368, %372 : vector<16x32xf32>
    %374 = vector.broadcast %354 : vector<1x32xf32> to vector<16x32xf32>
    %375 = arith.mulf %373, %374 : vector<16x32xf32>
    %376 = vector.broadcast %355 : vector<1x32xf32> to vector<16x32xf32>
    %377 = arith.addf %375, %376 : vector<16x32xf32>
    %378 = arith.truncf %377 : vector<16x32xf32> to vector<16x32xbf16>
    %cst_84 = arith.constant dense<0.000000e+00> : vector<16x64xf32>
    %379 = tpu.matmul %378, %232, %cst_84 {dimension_numbers = #tpu.dot_dimension_numbers<[1], [0], [0], [1], [0, 0, 1, 1], [], []>} : vector<16x32xbf16>, vector<32x64xbf16>, vector<16x64xf32> -> vector<16x64xf32>
    %380 = vector.broadcast %234 : vector<1x64xf32> to vector<16x64xf32>
    %381 = arith.addf %379, %380 : vector<16x64xf32>
    %cst_85 = arith.constant 5.000000e-01 : f32
    %382 = vector.broadcast %cst_85 : f32 to vector<16x64xf32>
    %383 = arith.mulf %382, %381 : vector<16x64xf32>
    %cst_86 = arith.constant 4.471500e-02 : f32
    %384 = vector.broadcast %cst_86 : f32 to vector<16x64xf32>
    %385 = arith.mulf %384, %381 : vector<16x64xf32>
    %386 = arith.mulf %385, %381 : vector<16x64xf32>
    %387 = arith.mulf %386, %381 : vector<16x64xf32>
    %388 = arith.addf %381, %387 : vector<16x64xf32>
    %cst_87 = arith.constant 0.797884583 : f32
    %389 = vector.broadcast %cst_87 : f32 to vector<16x64xf32>
    %390 = arith.mulf %389, %388 : vector<16x64xf32>
    %391 = math.tanh %390 : vector<16x64xf32>
    %cst_88 = arith.constant 1.000000e+00 : f32
    %392 = vector.broadcast %cst_88 : f32 to vector<16x64xf32>
    %393 = arith.addf %392, %391 : vector<16x64xf32>
    %394 = arith.mulf %383, %393 : vector<16x64xf32>
    %c1_89 = arith.constant 1 : index
    %c0_90 = arith.constant 0 : index
    %c0_91 = arith.constant 0 : index
    %395 = vector.load %arg5[%c1_89, %c0_90, %c0_91] : memref<2x64x32xbf16, #tpu.memory_space<vmem>>, vector<1x64x32xbf16>
    %396 = vector.shape_cast %395 : vector<1x64x32xbf16> to vector<64x32xbf16>
    %397 = arith.truncf %394 : vector<16x64xf32> to vector<16x64xbf16>
    %cst_92 = arith.constant dense<0.000000e+00> : vector<16x32xf32>
    %398 = tpu.matmul %397, %396, %cst_92 {dimension_numbers = #tpu.dot_dimension_numbers<[1], [0], [0], [1], [0, 0, 1, 1], [], []>} : vector<16x64xbf16>, vector<64x32xbf16>, vector<16x32xf32> -> vector<16x32xf32>
    %399 = vector.extract_strided_slice %0 {offsets = [11, 0], sizes = [1, 32], strides = [1, 1]} : vector<15x32xf32> to vector<1x32xf32>
    %400 = vector.broadcast %399 : vector<1x32xf32> to vector<16x32xf32>
    %401 = arith.addf %398, %400 : vector<16x32xf32>
    %402 = arith.addf %377, %401 : vector<16x32xf32>
    %403 = vector.extract_strided_slice %0 {offsets = [12, 0], sizes = [1, 32], strides = [1, 1]} : vector<15x32xf32> to vector<1x32xf32>
    %404 = vector.extract_strided_slice %0 {offsets = [13, 0], sizes = [1, 32], strides = [1, 1]} : vector<15x32xf32> to vector<1x32xf32>
    %cst_93 = arith.constant dense<0.000000e+00> : vector<16xf32>
    %405 = vector.multi_reduction <add>, %402, %cst_93 [1] : vector<16x32xf32> to vector<16xf32>
    %406 = vector.shape_cast %405 : vector<16xf32> to vector<16x1xf32>
    %cst_94 = arith.constant 3.200000e+01 : f32
    %407 = vector.broadcast %cst_94 : f32 to vector<16x1xf32>
    %408 = arith.divf %406, %407 : vector<16x1xf32>
    %409 = arith.mulf %402, %402 : vector<16x32xf32>
    %cst_95 = arith.constant dense<0.000000e+00> : vector<16xf32>
    %410 = vector.multi_reduction <add>, %409, %cst_95 [1] : vector<16x32xf32> to vector<16xf32>
    %411 = vector.shape_cast %410 : vector<16xf32> to vector<16x1xf32>
    %cst_96 = arith.constant 3.200000e+01 : f32
    %412 = vector.broadcast %cst_96 : f32 to vector<16x1xf32>
    %413 = arith.divf %411, %412 : vector<16x1xf32>
    %414 = arith.mulf %408, %408 : vector<16x1xf32>
    %415 = arith.subf %413, %414 : vector<16x1xf32>
    %416 = vector.broadcast %408 : vector<16x1xf32> to vector<16x32xf32>
    %417 = arith.subf %402, %416 : vector<16x32xf32>
    %cst_97 = arith.constant 9.99999996E-13 : f32
    %418 = vector.broadcast %cst_97 : f32 to vector<16x1xf32>
    %419 = arith.addf %415, %418 : vector<16x1xf32>
    %420 = math.rsqrt %419 : vector<16x1xf32>
    %421 = vector.broadcast %420 : vector<16x1xf32> to vector<16x32xf32>
    %422 = arith.mulf %417, %421 : vector<16x32xf32>
    %423 = vector.broadcast %403 : vector<1x32xf32> to vector<16x32xf32>
    %424 = arith.mulf %422, %423 : vector<16x32xf32>
    %425 = vector.broadcast %404 : vector<1x32xf32> to vector<16x32xf32>
    %426 = arith.addf %424, %425 : vector<16x32xf32>
    %427 = vector.extract_strided_slice %0 {offsets = [14, 0], sizes = [1, 16], strides = [1, 1]} : vector<15x32xf32> to vector<1x16xf32>
    %c0_98 = arith.constant 0 : index
    %c0_99 = arith.constant 0 : index
    %428 = vector.load %arg6[%c0_98, %c0_99] : memref<32x16xbf16, #tpu.memory_space<vmem>>, vector<32x16xbf16>
    %429 = arith.truncf %426 : vector<16x32xf32> to vector<16x32xbf16>
    %cst_100 = arith.constant dense<0.000000e+00> : vector<16x16xf32>
    %430 = tpu.matmul %429, %428, %cst_100 {dimension_numbers = #tpu.dot_dimension_numbers<[1], [0], [0], [1], [0, 0, 1, 1], [], []>} : vector<16x32xbf16>, vector<32x16xbf16>, vector<16x16xf32> -> vector<16x16xf32>
    %431 = vector.broadcast %427 : vector<1x16xf32> to vector<16x16xf32>
    %432 = arith.addf %430, %431 : vector<16x16xf32>
    %433 = math.tanh %432 : vector<16x16xf32>
    %c0_101 = arith.constant 0 : index
    %c0_102 = arith.constant 0 : index
    %434 = vector.load %arg7[%c0_101, %c0_102] : memref<16x16xf32, #tpu.memory_space<vmem>>, vector<16x16xf32>
    tpu.vector_store %arg7[%c0_101, %c0_102], %433 {strides = array<i32>} : memref<16x16xf32, #tpu.memory_space<vmem>>, vector<16x16xf32>,
    return
  }
}

</mosaic_0001>

<bundles_post_ra>
// kernel: textnet_forward.1
= control target key start
LH: loop header
LB: loop body
LE: loop exit
PB: predicated region body
PF: predicated region fallthrough
CT: control target
= control target key end

     0   :  { %vm32_vm0 = vcmask 261120   ;;  %v1999_v8 = vmov 32.0   ;;  %s2000_s16 = smov 88   ;;  %s2001_s17 = smov 96   ;;  %vm139_vm8 = vcmask 64512   ;;  %vm220_vm9 = vcmask 1043456   ;;  %s2590_s0 = inlined_call_operand.vmem [shape: f32[16,32], index: 0, kind: input, shape index: {}]   ;;  %s2591_s4 = inlined_call_operand.vmem [shape: bf16[2,32,192], index: 4, kind: input, shape index: {}]   ;;  %s2592_s2 = inlined_call_operand.vmem [shape: f32[15,32], index: 2, kind: input, shape index: {}]   ;;  %s2593_s3 = inlined_call_operand.vmem [shape: f32[2,160], index: 3, kind: input, shape index: {}]   ;;  %s2594_s1 = inlined_call_operand.vmem [shape: f32[2,8], index: 1, kind: input, shape index: {}]   ;;  %s2595_s5 = inlined_call_operand.vmem [shape: bf16[2,64,32], index: 5, kind: input, shape index: {}]   ;;  %s2596_s6 = inlined_call_operand.vmem [shape: bf16[32,16], index: 6, kind: input, shape index: {}]   ;;  %s2597_s7 = inlined_call_operand.vmem [shape: f32[16,16], index: 7, kind: output, shape index: {}]  }
   0x1   :  { %v2058_v0 = vld [vmem:[%s2590_s0] sm:$0xff]  ;;  %v2067_v3 = vld [vmem:[%s2590_s0 + $0x8] sm:$0xff]  ;;  %1899 = vrcp.f32 %v1999_v8  ;;  %v1716_v17 = vld [vmem:[%s2591_s4 + $0x10] sm:$0xf]  ;;  %s2002_s18 = smov 80   ;;  %s2003_s19 = smov 112  }
   0x2   :  { %v33_v1 = vsel %vm32_vm0, %v2058_v0, 0.0  ;;  %v48_v2 = vmul.f32 %v2058_v0, %v2058_v0  ;;  %v49_v5 = vmul.f32 %v2067_v3, %v2067_v3  ;;  %v36_v6 = vsel %vm32_vm0, %v2067_v3, 0.0  ;;  %v1838_v18 = vld [vmem:[%s2591_s4 + $0x14] sm:$0xf0]  ;;  %v1712_v21 = vld [vmem:[%s2591_s4] sm:$0xf] }
   0x3   :  { %34 = vadd.xlane.f32.xlu0 %v33_v1  ;;  %v2084_v20 = vor.u32 %v1838_v18, %v1716_v17  ;;  %v1836_v22 = vld [vmem:[%s2591_s4 + $0x4] sm:$0xf0]  ;;  %v2102_v46 = vld [vmem:[%s2592_s2] sm:$0xff]  ;;  %s2004_s20 = smov 72   ;;  %s2005_s21 = smov 120   ;;  %vm632_vm10 = vcmask 130048  }
   0x4   :  { %v50_v4 = vsel %vm32_vm0, %v48_v2, 0.0  ;;  %v53_v7 = vsel %vm32_vm0, %v49_v5, 0.0  ;;  %v2094_v25 = vor.u32 %v1836_v22, %v1712_v21  ;;  %v88_v50 = vperm.slane %v2102_v46, 0  ;;  %v2118_v61 = vld [vmem:[%s2593_s3] sm:$0xf]  ;;  %s2006_s22 = smov 104  }
   0x5   :  { %51 = vadd.xlane.f32.xlu1 %v50_v4  ;;  %124 = vmatpush.bf16.msra.mxu0 %v2084_v20  ;;  %v91_v56 = vperm.slane %v2102_v46, 1  ;;  %v2121_v62 = vperm.slane %v2118_v61, 0  ;;  %s2008_s25 = smov 56   ;;  %s2009_s26 = smov 48   ;;  %vm635_vm11 = vcmask 195584  }
   0x6   :  { %s2010_s27 = smov 40   ;;  %s2011_s0 = smov 32  }
   0x7   :  { %v1900_v9 = vpop.eup %1899  ;;  %s2012_s28 = smov 8   ;;  %s2013_s29 = smov 16  }
   0x8   :  { %v40_v10 = vmul.f32 32.0, %v1900_v9  ;;  %vm44_vm1 = vweird.f32 %v1900_v9  ;;  %s2014_s30 = smov 24  }
   0x9   :  { %125 = vmatpush.bf16.msra.mxu0 %v2094_v25 }
   0xa   :  { %v41_v11 = vsub.f32 1.0, %v40_v10 }
   0xb   :  { %37 = vadd.xlane.f32.xlu0 %v36_v6 }
   0xc   :  { %v42_v12 = vmul.f32 %v1900_v9, %v41_v11 }
   0xd   :  { %54 = vadd.xlane.f32.xlu1 %v53_v7 }
   0xe   :  { %v43_v13 = vadd.f32 %v1900_v9, %v42_v12 }
  0x10   :  { %v2075_v14 = vsel %vm44_vm1, %v1900_v9, %v43_v13 }
  0x76   :  { %v35_v15 = vpop.xlane.xlu0 %34 }
  0x77   :  { %v46_v16 = vmul.f32 %v2075_v14, %v35_v15 }
  0x78   :  { %v52_v19 = vpop.xlane.xlu1 %51 }
  0x79   :  { %v58_v23 = vmul.f32 %v46_v16, %v46_v16  ;;  %v56_v24 = vmul.f32 %v52_v19, %v2075_v14  ;;  %v62_v47 = vsub.f32 %v2058_v0, %v46_v16 }
  0x7b   :  { %v60_v26 = vsub.f32 %v56_v24, %v58_v23 }
  0x7d   :  { %v64_v27 = vadd.f32 1e-12, %v60_v26 }
  0x7e   :  { %v38_v28 = vpop.xlane.xlu0 %37 }
  0x7f   :  { %1901 = vrsqrt.f32 %v64_v27  ;;  %v47_v29 = vmul.f32 %v2075_v14, %v38_v28  ;;  %vm72_vm3 = vweird.f32 %v64_v27 }
  0x80   :  { %v55_v30 = vpop.xlane.xlu1 %54 }
  0x81   :  { %v59_v31 = vmul.f32 %v47_v29, %v47_v29  ;;  %v57_v32 = vmul.f32 %v55_v30, %v2075_v14  ;;  %v63_v52 = vsub.f32 %v2067_v3, %v47_v29 }
  0x83   :  { %v61_v33 = vsub.f32 %v57_v32, %v59_v31 }
  0x85   :  { %v1902_v34 = vpop.eup %1901  ;;  %v65_v35 = vadd.f32 1e-12, %v61_v33 }
  0x86   :  { %v67_v36 = vmul.f32 %v1902_v34, %v64_v27  ;;  %vm73_vm2 = vweird.f32 %v1902_v34 }
  0x87   :  { %1903 = vrsqrt.f32 %v65_v35  ;;  %vm74_vm4 = vmor %vm72_vm3, %vm73_vm2  ;;  %vm82_vm6 = vweird.f32 %v65_v35  ;;  %vm812_vm3 = vcmask 523264  }
  0x88   :  { %v68_v37 = vmul.f32 %v1902_v34, %v67_v36 }
  0x8a   :  { %v69_v38 = vmul.f32 0.5, %v68_v37 }
  0x8c   :  { %v70_v39 = vsub.f32 1.5, %v69_v38 }
  0x8d   :  { %v1904_v40 = vpop.eup %1903 }
  0x8e   :  { %v71_v41 = vmul.f32 %v1902_v34, %v70_v39  ;;  %v77_v42 = vmul.f32 %v1904_v40, %v65_v35  ;;  %vm83_vm5 = vweird.f32 %v1904_v40 }
  0x8f   :  { %vm84_vm7 = vmor %vm82_vm6, %vm83_vm5 }
  0x90   :  { %v78_v43 = vmul.f32 %v1904_v40, %v77_v42  ;;  %v75_v44 = vsel %vm74_vm4, %v1902_v34, %v71_v41  ;;  %v94_v34 = vld [vmem:[%s2594_s1] sm:$0x3]  ;;  %s2007_s1 = smov 64  }
  0x91   :  { %v86_v49 = vmul.f32 %v75_v44, %v62_v47  ;;  %v2176_v35 = vperm.slane %v94_v34, 0  ;;  %v96_v41 = vrot.slane %v94_v34, 1 }
  0x92   :  { %v79_v45 = vmul.f32 0.5, %v78_v43 }
  0x93   :  { %v89_v55 = vmul.f32 %v88_v50, %v86_v49  ;;  %v2180_v42 = vperm.slane %v96_v41, 0 }
  0x94   :  { %v80_v48 = vsub.f32 1.5, %v79_v45 }
  0x95   :  { %v2108_v58 = vadd.f32 %v91_v56, %v89_v55 }
  0x96   :  { %v81_v51 = vmul.f32 %v1904_v40, %v80_v48 }
  0x98   :  { %v85_v53 = vsel %vm84_vm7, %v1904_v40, %v81_v51 }
  0x99   :  { %v87_v54 = vmul.f32 %v85_v53, %v63_v52 }
  0x9b   :  { %v90_v57 = vmul.f32 %v88_v50, %v87_v54 }
  0x9d   :  { %v2110_v59 = vadd.f32 %v91_v56, %v90_v57 }
  0x9f   :  { %v101_v60 = vpack.c.bf16 %v2110_v59, %v2108_v58 }
  0xa1   :  { %1718 = vmatmul.msk.bf16.vlgmr.msra.gmra.mxu0 %vm32_vm0, %v101_v60 }
 0x11e   :  { %v127_v63 = vpop.f32.mrf.mxu0 }
 0x11f   :  { %v128_v0 = vadd.f32 %v127_v63, %v2121_v62 }
 0x121   :  { %v132_v1 = vpack.c.bf16 %v128_v0, %v128_v0 }
 0x123   :  { %v135_v2 = vunpack.c.l.b16 %v132_v1 }
 0x125   :  { %v2124_v3 = vpack.c.b16 %v135_v2, %v135_v2 }
 0x126   :  { %v129_v4 = vpop.f32.mrf.mxu0 }
 0x127   :  { %v130_v5 = vadd.f32 %v129_v4, %v2121_v62  ;;  %260 = vrot.lane.b32.xlu0 %v2124_v3, %s2000_s16  ;;  %137 = vrot.lane.b32.xlu2 %v2124_v3, %s2001_s17 }
 0x129   :  { %v133_v6 = vpack.c.bf16 %v130_v5, %v130_v5 }
 0x12b   :  { %v160_v7 = vunpack.c.l.b16 %v133_v6 }
 0x12d   :  { %v2131_v8 = vpack.c.b16 %v160_v7, %v160_v7 }
 0x12f   :  { %283 = vrot.lane.b32.xlu1 %v2131_v8, %s2000_s16  ;;  %399 = vrot.lane.b32.xlu0 %v2131_v8, %s2002_s18 }
 0x130   :  { %162 = vrot.lane.b32.xlu2 %v2131_v8, %s2001_s17 }
 0x137   :  { %397 = vrot.lane.b32.xlu1 %v2131_v8, %s2003_s19  ;;  %492 = vrot.lane.b32.xlu0 %v2124_v3, %s2004_s20 }
 0x138   :  { %258 = vrot.lane.b32.xlu2 %v2124_v3, %s2005_s21 }
 0x13f   :  { %490 = vrot.lane.b32.xlu1 %v2124_v3, %s2006_s22  ;;  %513 = vrot.lane.b32.xlu0 %v2131_v8, %s2006_s22 }
 0x140   :  { %281 = vrot.lane.b32.xlu2 %v2131_v8, %s2005_s21 }
 0x148   :  { %376 = vrot.lane.b32.xlu2 %v2124_v3, %s2002_s18 }
 0x150   :  { %374 = vrot.lane.b32.xlu2 %v2124_v3, %s2003_s19 }
 0x158   :  { %515 = vrot.lane.b32.xlu2 %v2131_v8, %s2004_s20 }
 0x181   :  { %v138_v9 = vpop.permute.xlu2 %137 }
 0x182   :  { %v144_v10 = vsel %vm139_vm8, %v138_v9, 0 }
 0x183   :  { %153 = vmatpush.bf16.xpose.msra.mxu1 %v144_v10 }
 0x18a   :  { %v163_v11 = vpop.permute.xlu2 %162  ;;  %1719 = vmatmul.msk.bf16.vlgmr.msra.gmra.mxu1 %vm139_vm8, %v132_v1 }
 0x18b   :  { %v168_v12 = vsel %vm139_vm8, %v163_v11, 0 }
 0x18c   :  { %177 = vmatpush.bf16.xpose.msra.mxu2 %v168_v12 }
 0x192   :  { %v259_v13 = vpop.permute.xlu2 %258 }
 0x193   :  { %1720 = vmatmul.msk.bf16.vlgmr.msra.gmra.mxu2 %vm139_vm8, %v133_v6 }
 0x199   :  { %v261_v15 = vpop.permute.xlu0 %260 }
 0x19a   :  { %v282_v16 = vpop.permute.xlu2 %281  ;;  %v266_v17 = vsel %vm139_vm8, %v261_v15, 0 }
 0x19b   :  { %275 = vmatpush.bf16.xpose.msrb.mxu0 %v266_v17 }
 0x1a1   :  { %v284_v18 = vpop.permute.xlu1 %283  ;;  %v400_v19 = vpop.permute.xlu0 %399 }
 0x1a2   :  { %v405_v21 = vsel %vm139_vm8, %v400_v19, 0  ;;  %v377_v22 = vpop.permute.xlu2 %376  ;;  %1723 = vmatmul.msk.bf16.vlgmr.msrb.gmra.mxu0 %vm139_vm8, %v259_v13  ;;  %v289_v23 = vsel %vm139_vm8, %v284_v18, 0 }
 0x1a3   :  { %v382_v24 = vsel %vm139_vm8, %v377_v22, 0  ;;  %298 = vmatpush.bf16.xpose.msrb.mxu1 %v289_v23 }
 0x1a4   :  { %391 = vmatpush.bf16.xpose.msra.mxu0 %v382_v24 }
 0x1a9   :  { %v493_v26 = vpop.permute.xlu0 %492  ;;  %v398_v31 = vpop.permute.xlu1 %397 }
 0x1aa   :  { %v498_v27 = vsel %vm139_vm8, %v493_v26, 0  ;;  %v375_v28 = vpop.permute.xlu2 %374  ;;  %1724 = vmatmul.msk.bf16.vlgmr.msrb.gmra.mxu1 %vm139_vm8, %v282_v16 }
 0x1ab   :  { %414 = vmatpush.bf16.xpose.msra.mxu1 %v405_v21 }
 0x1ac   :  { %507 = vmatpush.bf16.xpose.msrb.mxu0 %v498_v27 }
 0x1b1   :  { %v491_v32 = vpop.permute.xlu1 %490  ;;  %v514_v33 = vpop.permute.xlu0 %513 }
 0x1b2   :  { %v516_v29 = vpop.permute.xlu2 %515  ;;  %1727 = vmatmul.msk.bf16.vlgmr.msra.gmra.mxu0 %vm139_vm8, %v375_v28 }
 0x1b3   :  { %v521_v30 = vsel %vm139_vm8, %v516_v29, 0 }
 0x1b4   :  { %530 = vmatpush.bf16.xpose.msrb.mxu1 %v521_v30 }
 0x1ba   :  { %1728 = vmatmul.msk.bf16.vlgmr.msra.gmra.mxu1 %vm139_vm8, %v398_v31 }
 0x1c2   :  { %1731 = vmatmul.msk.bf16.vlgmr.msrb.gmra.mxu0 %vm139_vm8, %v491_v32 }
 0x1ca   :  { %1732 = vmatmul.msk.bf16.vlgmr.msrb.gmra.mxu1 %vm139_vm8, %v514_v33 }
 0x207   :  { %v155_v36 = vpop.f32.mrf.mxu1 }
 0x208   :  { %v183_v37 = vmul.f32 0.35355338, %v155_v36 }
 0x20a   :  { %v189_v38 = vadd.f32 %v2176_v35, %v183_v37 }
 0x20c   :  { %v191_v39 = vsel %vm139_vm8, %v189_v38, -inf }
 0x20d   :  { %192 = vmax.xlane.f32.xlu2 %v191_v39 }
 0x20f   :  { %v157_v40 = vpop.f32.mrf.mxu1 }
 0x216   :  { %v179_v43 = vpop.f32.mrf.mxu2 }
 0x217   :  { %v184_v44 = vmul.f32 0.35355338, %v179_v43 }
 0x219   :  { %v190_v45 = vadd.f32 %v2180_v42, %v184_v44 }
 0x21b   :  { %v194_v47 = vsel %vm139_vm8, %v190_v45, -inf }
 0x21c   :  { %195 = vmax.xlane.f32.xlu1 %v194_v47 }
 0x21e   :  { %v181_v48 = vpop.f32.mrf.mxu2 }
 0x21f   :  { %v277_v49 = vpop.f32.mrf.mxu0 }
 0x220   :  { %v304_v50 = vmul.f32 0.35355338, %v277_v49 }
 0x222   :  { %v306_v51 = vadd.f32 %v304_v50, %v2176_v35 }
 0x224   :  { %v308_v52 = vsel %vm139_vm8, %v306_v51, -inf }
 0x225   :  { %237 = vrot.lane.b32.xlu2 %v2131_v8, %s2007_s1  ;;  %309 = vmax.xlane.f32.xlu0 %v308_v52 }
 0x227   :  { %v279_v53 = vpop.f32.mrf.mxu0  ;;  %v300_v54 = vpop.f32.mrf.mxu1 }
 0x228   :  { %v305_v4 = vmul.f32 0.35355338, %v300_v54 }
 0x22a   :  { %v307_v6 = vadd.f32 %v305_v4, %v2180_v42 }
 0x22c   :  { %v311_v9 = vsel %vm139_vm8, %v307_v6, -inf }
 0x22d   :  { %353 = vrot.lane.b32.xlu2 %v2131_v8, %s2008_s25 }
 0x22f   :  { %v302_v55 = vpop.f32.mrf.mxu1  ;;  %v393_v56 = vpop.f32.mrf.mxu0 }
 0x230   :  { %v420_v10 = vmul.f32 0.35355338, %v393_v56 }
 0x232   :  { %v422_v13 = vadd.f32 %v420_v10, %v2176_v35 }
 0x234   :  { %v424_v16 = vsel %vm139_vm8, %v422_v13, -inf }
 0x235   :  { %215 = vrot.lane.b32.xlu1 %v2124_v3, %s2007_s1 }
 0x237   :  { %v395_v57 = vpop.f32.mrf.mxu0  ;;  %v416_v60 = vpop.f32.mrf.mxu1 }
 0x238   :  { %v421_v12 = vmul.f32 0.35355338, %v416_v60 }
 0x239   :  { %332 = vrot.lane.b32.xlu0 %v2124_v3, %s2008_s25 }
 0x23a   :  { %v423_v17 = vadd.f32 %v421_v12, %v2180_v42 }
 0x23c   :  { %v427_v19 = vsel %vm139_vm8, %v423_v17, -inf }
 0x23f   :  { %v418_v63 = vpop.f32.mrf.mxu1  ;;  %v509_v0 = vpop.f32.mrf.mxu0 }
 0x240   :  { %v536_v18 = vmul.f32 0.35355338, %v509_v0 }
 0x242   :  { %v538_v21 = vadd.f32 %v536_v18, %v2176_v35 }
 0x244   :  { %v540_v22 = vsel %vm139_vm8, %v538_v21, -inf }
 0x247   :  { %v511_v1 = vpop.f32.mrf.mxu0  ;;  %v532_v2 = vpop.f32.mrf.mxu1 }
 0x248   :  { %v537_v7 = vmul.f32 0.35355338, %v532_v2 }
 0x24a   :  { %v2197_v11 = vadd.f32 %v537_v7, %v2180_v42 }
 0x24c   :  { %v543_v15 = vsel %vm139_vm8, %v2197_v11, -inf }
 0x24f   :  { %v534_v5 = vpop.f32.mrf.mxu1 }
 0x256   :  { %312 = vmax.xlane.f32.xlu2 %v311_v9 }
 0x25e   :  { %544 = vmax.xlane.f32.xlu2 %v543_v15 }
 0x25f   :  { %425 = vmax.xlane.f32.xlu1 %v424_v16 }
 0x263   :  { %428 = vmax.xlane.f32.xlu0 %v427_v19 }
 0x26b   :  { %541 = vmax.xlane.f32.xlu0 %v540_v22 }
 0x280   :  { %v193_v23 = vpop.xlane.xlu2 %192 }
 0x281   :  { %v197_v24 = vsub.f32 %v189_v38, %v193_v23 }
 0x283   :  { %v199_v26 = vmul.f32 1.442695, %v197_v24 }
 0x285   :  { %1905 = vpow2.f32 %v199_v26 }
 0x288   :  { %v238_v38 = vpop.permute.xlu2 %237 }
 0x289   :  { %v243_v43 = vsel %vm220_vm9, %v238_v38, 0 }
 0x28b   :  { %v2207_v27 = vpop.eup %1905 }
 0x28c   :  { %v203_v28 = vsel %vm139_vm8, %v2207_v27, 0.0 }
 0x28d   :  { %204 = vadd.xlane.f32.xlu2 %v203_v28 }
 0x28f   :  { %v196_v29 = vpop.xlane.xlu1 %195 }
 0x290   :  { %v198_v32 = vsub.f32 %v190_v45, %v196_v29  ;;  %v354_v48 = vpop.permute.xlu2 %353 }
 0x292   :  { %v201_v34 = vmul.f32 1.442695, %v198_v32 }
 0x298   :  { %v310_v30 = vpop.xlane.xlu0 %309 }
 0x299   :  { %v314_v31 = vsub.f32 %v306_v51, %v310_v30 }
 0x29b   :  { %v316_v33 = vmul.f32 1.442695, %v314_v31 }
 0x29d   :  { %1907 = vpow2.f32 %v316_v33 }
 0x29e   :  { %1909 = vpow2.f32 %v201_v34 }
 0x2a3   :  { %v2211_v36 = vpop.eup %1907 }
 0x2a4   :  { %v320_v37 = vsel %vm139_vm8, %v2211_v36, 0.0  ;;  %v2218_v41 = vpop.eup %1909 }
 0x2a5   :  { %321 = vadd.xlane.f32.xlu0 %v320_v37  ;;  %469 = vrot.lane.b32.xlu2 %v2131_v8, %s2009_s26  ;;  %v206_v47 = vsel %vm139_vm8, %v2218_v41, 0.0 }
 0x2a7   :  { %v216_v39 = vpop.permute.xlu1 %215 }
 0x2a8   :  { %v222_v40 = vsel %vm220_vm9, %v216_v39, 0 }
 0x2a9   :  { %231 = vmatpush.bf16.msra.mxu3 %v222_v40 }
 0x2ab   :  { %v333_v44 = vpop.permute.xlu0 %332 }
 0x2ac   :  { %v338_v45 = vsel %vm220_vm9, %v333_v44, 0 }
 0x2ad   :  { %252 = vmatpush.bf16.msrb.mxu3 %v243_v43  ;;  %347 = vmatpush.bf16.msrb.mxu2 %v338_v45 }
 0x2ae   :  { %207 = vadd.xlane.f32.xlu0 %v206_v47 }
 0x2c9   :  { %v313_v49 = vpop.xlane.xlu2 %312 }
 0x2ca   :  { %v315_v50 = vsub.f32 %v307_v6, %v313_v49 }
 0x2cc   :  { %v318_v51 = vmul.f32 1.442695, %v315_v50 }
 0x2ce   :  { %1911 = vpow2.f32 %v318_v51 }
 0x2d1   :  { %v545_v12 = vpop.xlane.xlu2 %544 }
 0x2d2   :  { %v426_v52 = vpop.xlane.xlu1 %425  ;;  %v547_v16 = vsub.f32 %v2197_v11, %v545_v12 }
 0x2d3   :  { %v430_v53 = vsub.f32 %v422_v13, %v426_v52 }
 0x2d4   :  { %v1912_v54 = vpop.eup %1911  ;;  %v550_v19 = vmul.f32 1.442695, %v547_v16 }
 0x2d5   :  { %v432_v55 = vmul.f32 1.442695, %v430_v53  ;;  %v323_v56 = vsel %vm139_vm8, %v1912_v54, 0.0 }
 0x2d6   :  { %v429_v57 = vpop.xlane.xlu0 %428  ;;  %324 = vadd.xlane.f32.xlu1 %v323_v56 }
 0x2d7   :  { %1913 = vpow2.f32 %v432_v55  ;;  %v431_v60 = vsub.f32 %v423_v17, %v429_v57 }
 0x2d9   :  { %v434_v63 = vmul.f32 1.442695, %v431_v60 }
 0x2db   :  { %1915 = vpow2.f32 %v434_v63 }
 0x2dd   :  { %v2225_v0 = vpop.eup %1913 }
 0x2de   :  { %v542_v1 = vpop.xlane.xlu0 %541  ;;  %v436_v2 = vsel %vm139_vm8, %v2225_v0, 0.0 }
 0x2df   :  { %v546_v4 = vsub.f32 %v538_v21, %v542_v1  ;;  %437 = vadd.xlane.f32.xlu2 %v436_v2  ;;  %v359_v21 = vsel %vm220_vm9, %v354_v48, 0 }
 0x2e1   :  { %v1916_v5 = vpop.eup %1915  ;;  %v548_v6 = vmul.f32 1.442695, %v546_v4 }
 0x2e2   :  { %v439_v7 = vsel %vm139_vm8, %v1916_v5, 0.0 }
 0x2e3   :  { %1917 = vpow2.f32 %v548_v6  ;;  %440 = vadd.xlane.f32.xlu0 %v439_v7 }
 0x2e9   :  { %v2230_v9 = vpop.eup %1917 }
 0x2ea   :  { %v552_v10 = vsel %vm139_vm8, %v2230_v9, 0.0 }
 0x2eb   :  { %553 = vadd.xlane.f32.xlu0 %v552_v10 }
 0x2ef   :  { %448 = vrot.lane.b32.xlu1 %v2124_v3, %s2009_s26 }
 0x2f7   :  { %585 = vrot.lane.b32.xlu2 %v2131_v8, %s2010_s27 }
 0x2ff   :  { %564 = vrot.lane.b32.xlu0 %v2124_v3, %s2010_s27 }
 0x300   :  { %v205_v13 = vpop.xlane.xlu2 %204 }
 0x301   :  { %1919 = vrcp.f32 %v205_v13 }
 0x302   :  { %1921 = vpow2.f32 %v550_v19 }
 0x307   :  { %v1920_v15 = vpop.eup %1919  ;;  %642 = vrot.lane.b32.xlu0 %v2084_v20, %s2011_s0 }
 0x308   :  { %v211_v17 = vmul.f32 %v1920_v15, %v2207_v27  ;;  %v1922_v8 = vpop.eup %1921  ;;  %v470_v29 = vpop.permute.xlu2 %469 }
 0x309   :  { %v555_v23 = vsel %vm139_vm8, %v1922_v8, 0.0  ;;  %v475_v31 = vsel %vm220_vm9, %v470_v29, 0 }
 0x30a   :  { %v213_v18 = vpack.c.bf16 %v211_v17, %v211_v17 }
 0x30c   :  { %1721 = vmatmul.msk.bf16.vlgmr.msra.gmra.mxu3 %vm139_vm8, %v213_v18 }
 0x30d   :  { %368 = vmatpush.bf16.msra.mxu3 %v359_v21 }
 0x318   :  { %v322_v22 = vpop.xlane.xlu0 %321 }
 0x319   :  { %1923 = vrcp.f32 %v322_v22  ;;  %556 = vadd.xlane.f32.xlu1 %v555_v23 }
 0x31f   :  { %v1924_v3 = vpop.eup %1923 }
 0x320   :  { %v328_v24 = vmul.f32 %v1924_v3, %v2211_v36 }
 0x321   :  { %v208_v11 = vpop.xlane.xlu0 %207 }
 0x322   :  { %1925 = vrcp.f32 %v208_v11  ;;  %v330_v26 = vpack.c.bf16 %v328_v24, %v328_v24 }
 0x324   :  { %1725 = vmatmul.msk.bf16.vlgmr.msrb.gmra.mxu2 %vm139_vm8, %v330_v26 }
 0x328   :  { %v1926_v27 = vpop.eup %1925 }
 0x329   :  { %v212_v28 = vmul.f32 %v1926_v27, %v2218_v41 }
 0x32b   :  { %v214_v30 = vpack.c.bf16 %v212_v28, %v212_v28 }
 0x32d   :  { %1722 = vmatmul.msk.bf16.vlgmr.msrb.gmra.mxu3 %vm139_vm8, %v214_v30 }
 0x32e   :  { %484 = vmatpush.bf16.msrb.mxu3 %v475_v31 }
 0x349   :  { %v325_v32 = vpop.xlane.xlu1 %324 }
 0x34a   :  { %1927 = vrcp.f32 %v325_v32 }
 0x350   :  { %v1928_v33 = vpop.eup %1927 }
 0x351   :  { %v329_v34 = vmul.f32 %v1928_v33, %v1912_v54 }
 0x352   :  { %v438_v36 = vpop.xlane.xlu2 %437 }
 0x353   :  { %v331_v37 = vpack.c.bf16 %v329_v34, %v329_v34  ;;  %1929 = vrcp.f32 %v438_v36 }
 0x355   :  { %1726 = vmatmul.msk.bf16.vlgmr.msra.gmra.mxu3 %vm139_vm8, %v331_v37 }
 0x356   :  { %v441_v38 = vpop.xlane.xlu0 %440 }
 0x357   :  { %1931 = vrcp.f32 %v441_v38 }
 0x359   :  { %v1930_v41 = vpop.eup %1929 }
 0x35a   :  { %v586_v39 = vpop.permute.xlu2 %585  ;;  %v444_v45 = vmul.f32 %v1930_v41, %v2225_v0 }
 0x35b   :  { %v591_v40 = vsel %vm220_vm9, %v586_v39, 0 }
 0x35c   :  { %600 = vmatpush.bf16.msra.mxu3 %v591_v40  ;;  %v446_v50 = vpack.c.bf16 %v444_v45, %v444_v45  ;;  %v639_v40 = vperm.slane %v2102_v46, 2 }
 0x35d   :  { %v1932_v43 = vpop.eup %1931 }
 0x35e   :  { %v445_v44 = vmul.f32 %v1932_v43, %v1916_v5  ;;  %v554_v51 = vpop.xlane.xlu0 %553 }
 0x35f   :  { %1933 = vrcp.f32 %v554_v51 }
 0x360   :  { %v447_v49 = vpack.c.bf16 %v445_v44, %v445_v44 }
 0x361   :  { %v449_v47 = vpop.permute.xlu1 %448 }
 0x362   :  { %v454_v48 = vsel %vm220_vm9, %v449_v47, 0 }
 0x363   :  { %463 = vmatpush.bf16.msra.mxu2 %v454_v48 }
 0x365   :  { %1730 = vmatmul.msk.bf16.vlgmr.msrb.gmra.mxu3 %vm139_vm8, %v447_v49  ;;  %v1934_v52 = vpop.eup %1933 }
 0x366   :  { %1729 = vmatmul.msk.bf16.vlgmr.msra.gmra.mxu2 %vm139_vm8, %v446_v50  ;;  %v560_v53 = vmul.f32 %v1934_v52, %v2230_v9 }
 0x368   :  { %v562_v56 = vpack.c.bf16 %v560_v53, %v560_v53 }
 0x371   :  { %v565_v54 = vpop.permute.xlu0 %564 }
 0x372   :  { %v570_v55 = vsel %vm220_vm9, %v565_v54, 0 }
 0x373   :  { %579 = vmatpush.bf16.msrb.mxu2 %v570_v55 }
 0x376   :  { %1733 = vmatmul.msk.bf16.vlgmr.msrb.gmra.mxu2 %vm139_vm8, %v562_v56 }
 0x379   :  { %v643_v21 = vpop.permute.xlu0 %642 }
 0x37a   :  { %655 = vmatpush.bf16.msra.mxu0 %v643_v21 }
 0x38c   :  { %v557_v20 = vpop.xlane.xlu1 %556 }
 0x38d   :  { %1935 = vrcp.f32 %v557_v20  ;;  %v1837_v20 = vld [vmem:[%s2591_s4 + $0x14] sm:$0xf] }
 0x38f   :  { %v233_v57 = vpop.f32.mrf.mxu3 }
 0x393   :  { %v1936_v60 = vpop.eup %1935 }
 0x394   :  { %v561_v63 = vmul.f32 %v1936_v60, %v1922_v8 }
 0x396   :  { %v563_v0 = vpack.c.bf16 %v561_v63, %v561_v63 }
 0x397   :  { %v235_v1 = vpop.f32.mrf.mxu3 }
 0x398   :  { %1734 = vmatmul.msk.bf16.vlgmr.msra.gmra.mxu3 %vm139_vm8, %v563_v0  ;;  %v1835_v1 = vld [vmem:[%s2591_s4 + $0x4] sm:$0xf] }
 0x3a7   :  { %v349_v2 = vpop.f32.mrf.mxu2 }
 0x3af   :  { %v351_v5 = vpop.f32.mrf.mxu2 }
 0x3b0   :  { %v254_v4 = vpop.f32.mrf.mxu3 }
 0x3b8   :  { %v256_v6 = vpop.f32.mrf.mxu3 }
 0x3d8   :  { %v370_v7 = vpop.f32.mrf.mxu3 }
 0x3d9   :  { %v1869_v9 = vpack.i.bf16 %v370_v7, %v349_v2  ;;  %v1736_v2 = vld [vmem:[%s2591_s4 + $0x8] sm:$0xf0] }
 0x3db   :  { %1870 = vrot.lane.b32.xlu2 %v1869_v9, %s2012_s28 }
 0x3e0   :  { %v372_v10 = vpop.f32.mrf.mxu3 }
 0x3e8   :  { %v486_v12 = vpop.f32.mrf.mxu3 }
 0x3e9   :  { %v465_v13 = vpop.f32.mrf.mxu2 }
 0x3ea   :  { %v1874_v15 = vpack.i.bf16 %v486_v12, %v465_v13  ;;  %v725_v13 = vperm.slane %v2121_v62, 0 }
 0x3ec   :  { %1875 = vrot.lane.b32.xlu0 %v1874_v15, %s2013_s29 }
 0x3f0   :  { %v488_v16 = vpop.f32.mrf.mxu3 }
 0x3f1   :  { %v467_v17 = vpop.f32.mrf.mxu2  ;;  %v722_v16 = vperm.slane %v2118_v61, 2 }
 0x3f3   :  { %v726_v21 = vperm.slane %v722_v16, 0 }
 0x3f4   :  { %640 = vrot.lane.b32.xlu0 %v2094_v25, %s2011_s0 }
 0x3f9   :  { %v581_v18 = vpop.f32.mrf.mxu2 }
 0x401   :  { %v583_v19 = vpop.f32.mrf.mxu2 }
 0x41b   :  { %v602_v8 = vpop.f32.mrf.mxu3 }
 0x41c   :  { %v1879_v22 = vpack.i.bf16 %v602_v8, %v581_v18 }
 0x41e   :  { %1880 = vrot.lane.b32.xlu2 %v1879_v22, %s2014_s30 }
 0x423   :  { %v604_v23 = vpop.f32.mrf.mxu3 }
 0x435   :  { %v1871_v11 = vpop.permute.xlu2 %1870 }
 0x436   :  { %v1873_v26 = vunpack.i.h.bf16 %v1871_v11  ;;  %v1872_v27 = vunpack.i.l.bf16 %v1871_v11 }
 0x438   :  { %v631_v30 = vsel %vm139_vm8, %v254_v4, %v1873_v26  ;;  %v630_v31 = vsel %vm139_vm8, %v233_v57, %v1872_v27  ;;  %v1740_v57 = vld [vmem:[%s2591_s4 + $0x18] sm:$0xf0]  ;;  %v1739_v4 = vor.u32 %v1835_v1, %v1736_v2 }
 0x439   :  { %v1743_v63 = vor.u32 %v1837_v20, %v1740_v57 }
 0x43b   :  { %752 = vmatpush.bf16.msra.mxu1 %v1743_v63 }
 0x43f   :  { %753 = vmatpush.bf16.msra.mxu1 %v1739_v4 }
 0x45e   :  { %v1876_v3 = vpop.permute.xlu0 %1875 }
 0x45f   :  { %v1878_v28 = vunpack.i.h.bf16 %v1876_v3  ;;  %v1877_v29 = vunpack.i.l.bf16 %v1876_v3 }
 0x461   :  { %v633_v34 = vsel %vm632_vm10, %v630_v31, %v1877_v29  ;;  %v634_v36 = vsel %vm632_vm10, %v631_v30, %v1878_v28 }
 0x466   :  { %v641_v24 = vpop.permute.xlu0 %640 }
 0x467   :  { %656 = vmatpush.bf16.msra.mxu0 %v641_v24 }
 0x478   :  { %v1881_v25 = vpop.permute.xlu2 %1880 }
 0x479   :  { %v1883_v32 = vunpack.i.h.bf16 %v1881_v25  ;;  %v1882_v33 = vunpack.i.l.bf16 %v1881_v25  ;;  %v713_v25 = vperm.slane %v2102_v46, 3 }
 0x47b   :  { %v636_v37 = vsel %vm635_vm11, %v633_v34, %v1882_v33  ;;  %v637_v38 = vsel %vm635_vm11, %v634_v36, %v1883_v32 }
 0x47c   :  { %v638_v39 = vpack.c.bf16 %v637_v38, %v636_v37  ;;  %v716_v37 = vperm.slane %v2102_v46, 4 }
 0x47e   :  { %1735 = vmatmul.msk.bf16.vlgmr.msra.gmra.mxu0 %vm32_vm0, %v638_v39 }
 0x4fb   :  { %v658_v41 = vpop.f32.mrf.mxu0 }
 0x4fc   :  { %v659_v43 = vadd.f32 %v658_v41, %v639_v40 }
 0x4fe   :  { %v663_v44 = vadd.f32 %v659_v43, %v2108_v58 }
 0x500   :  { %v665_v45 = vsel %vm32_vm0, %v663_v44, 0.0  ;;  %v673_v47 = vmul.f32 %v663_v44, %v663_v44 }
 0x501   :  { %666 = vadd.xlane.f32.xlu1 %v665_v45  ;;  %v1841_v45 = vld [vmem:[%s2595_s5 + $0x10] sm:$0xff] }
 0x502   :  { %v675_v48 = vsel %vm32_vm0, %v673_v47, 0.0  ;;  %v1840_v47 = vld [vmem:[%s2595_s5 + $0x8] sm:$0xff] }
 0x503   :  { %v660_v49 = vpop.f32.mrf.mxu0  ;;  %676 = vadd.xlane.f32.xlu0 %v675_v48 }
 0x504   :  { %v661_v50 = vadd.f32 %v660_v49, %v639_v40  ;;  %v1839_v49 = vld [vmem:[%s2595_s5] sm:$0xff] }
 0x506   :  { %v664_v51 = vadd.f32 %v661_v50, %v2110_v59 }
 0x508   :  { %v668_v52 = vsel %vm32_vm0, %v664_v51, 0.0  ;;  %v674_v53 = vmul.f32 %v664_v51, %v664_v51 }
 0x509   :  { %669 = vadd.xlane.f32.xlu2 %v668_v52 }
 0x50a   :  { %v678_v54 = vsel %vm32_vm0, %v674_v53, 0.0 }
 0x50b   :  { %679 = vadd.xlane.f32.xlu1 %v678_v54 }
 0x524   :  { %737 = vrot.lane.b32.xlu1 %v725_v13, %s2011_s0 }
 0x52c   :  { %739 = vrot.lane.b32.xlu1 %v726_v21, %s2011_s0 }
 0x574   :  { %v667_v55 = vpop.xlane.xlu1 %666 }
 0x575   :  { %v671_v58 = vmul.f32 %v667_v55, %v2075_v14 }
 0x576   :  { %v677_v56 = vpop.xlane.xlu0 %676 }
 0x577   :  { %v683_v59 = vmul.f32 %v671_v58, %v671_v58  ;;  %v681_v60 = vmul.f32 %v677_v56, %v2075_v14  ;;  %v687_v28 = vsub.f32 %v663_v44, %v671_v58  ;;  %v1842_v44 = vld [vmem:[%s2595_s5 + $0x18] sm:$0xff] }
 0x578   :  { %820 = vmatpush.bf16.msra.mxu2 %v1842_v44 }
 0x579   :  { %v685_v0 = vsub.f32 %v681_v60, %v683_v59 }
 0x57b   :  { %v689_v5 = vadd.f32 1e-12, %v685_v0 }
 0x57c   :  { %v670_v6 = vpop.xlane.xlu2 %669  ;;  %821 = vmatpush.bf16.msra.mxu2 %v1841_v45 }
 0x57d   :  { %1937 = vrsqrt.f32 %v689_v5  ;;  %v672_v7 = vmul.f32 %v670_v6, %v2075_v14  ;;  %vm697_vm13 = vweird.f32 %v689_v5 }
 0x57e   :  { %v680_v9 = vpop.xlane.xlu1 %679 }
 0x57f   :  { %v684_v10 = vmul.f32 %v672_v7, %v672_v7  ;;  %v682_v12 = vmul.f32 %v680_v9, %v2075_v14  ;;  %v688_v32 = vsub.f32 %v664_v51, %v672_v7 }
 0x580   :  { %822 = vmatpush.bf16.msra.mxu2 %v1840_v47 }
 0x581   :  { %v686_v15 = vsub.f32 %v682_v12, %v684_v10 }
 0x583   :  { %v1938_v17 = vpop.eup %1937  ;;  %v690_v18 = vadd.f32 1e-12, %v686_v15  ;;  %v787_v15 = vperm.slane %v2102_v46, 5 }
 0x584   :  { %v692_v19 = vmul.f32 %v1938_v17, %v689_v5  ;;  %vm698_vm12 = vweird.f32 %v1938_v17  ;;  %823 = vmatpush.bf16.msra.mxu2 %v1839_v49 }
 0x585   :  { %1939 = vrsqrt.f32 %v690_v18  ;;  %vm699_vm14 = vmor %vm697_vm13, %vm698_vm12  ;;  %vm707_vm1 = vweird.f32 %v690_v18 }
 0x586   :  { %v693_v8 = vmul.f32 %v1938_v17, %v692_v19 }
 0x588   :  { %v694_v22 = vmul.f32 0.5, %v693_v8 }
 0x58a   :  { %v695_v23 = vsub.f32 1.5, %v694_v22 }
 0x58b   :  { %v1940_v3 = vpop.eup %1939 }
 0x58c   :  { %v696_v24 = vmul.f32 %v1938_v17, %v695_v23  ;;  %v702_v11 = vmul.f32 %v1940_v3, %v690_v18  ;;  %vm708_vm15 = vweird.f32 %v1940_v3 }
 0x58d   :  { %vm709_vm2 = vmor %vm707_vm1, %vm708_vm15 }
 0x58e   :  { %v703_v62 = vmul.f32 %v1940_v3, %v702_v11  ;;  %v700_v26 = vsel %vm699_vm14, %v1938_v17, %v696_v24 }
 0x58f   :  { %v711_v30 = vmul.f32 %v700_v26, %v687_v28  ;;  %v1772_v28 = vld [vmem:[%s2591_s4 + $0x30] sm:$0xf] }
 0x590   :  { %v704_v27 = vmul.f32 0.5, %v703_v62 }
 0x591   :  { %v714_v34 = vmul.f32 %v713_v25, %v711_v30 }
 0x592   :  { %v705_v29 = vsub.f32 1.5, %v704_v27 }
 0x593   :  { %v717_v39 = vadd.f32 %v716_v37, %v714_v34  ;;  %v1844_v34 = vld [vmem:[%s2591_s4 + $0x24] sm:$0xf0] }
 0x594   :  { %v706_v31 = vmul.f32 %v1940_v3, %v705_v29  ;;  %v1846_v29 = vld [vmem:[%s2591_s4 + $0x34] sm:$0xf0] }
 0x596   :  { %v710_v33 = vsel %vm709_vm2, %v1940_v3, %v706_v31  ;;  %v738_v43 = vpop.permute.xlu1 %737  ;;  %v2331_v31 = vor.u32 %v1846_v29, %v1772_v28 }
 0x597   :  { %v712_v36 = vmul.f32 %v710_v33, %v688_v32  ;;  %v1768_v33 = vld [vmem:[%s2591_s4 + $0x20] sm:$0xf] }
 0x598   :  { %914 = vmatpush.bf16.msrb.mxu3 %v2331_v31 }
 0x599   :  { %v715_v38 = vmul.f32 %v713_v25, %v712_v36  ;;  %v2340_v36 = vor.u32 %v1844_v34, %v1768_v33 }
 0x59b   :  { %v718_v40 = vadd.f32 %v716_v37, %v715_v38 }
 0x59c   :  { %915 = vmatpush.bf16.msrb.mxu3 %v2340_v36 }
 0x59d   :  { %v719_v41 = vpack.c.bf16 %v718_v40, %v717_v39 }
 0x59e   :  { %v740_v48 = vpop.permute.xlu1 %739 }
 0x59f   :  { %1744 = vmatmul.msk.bf16.vlgmr.msra.gmra.mxu1 %vm32_vm0, %v719_v41  ;;  %v741_v50 = vsel %vm32_vm0, %v738_v43, %v740_v48 }
 0x61c   :  { %v755_v51 = vpop.f32.mrf.mxu1 }
 0x61d   :  { %v756_v52 = vadd.f32 %v755_v51, %v741_v50 }
 0x61f   :  { %v762_v53 = vmul.f32 0.044715, %v756_v52  ;;  %v760_v6 = vmul.f32 0.5, %v756_v52 }
 0x621   :  { %v764_v54 = vmul.f32 %v762_v53, %v756_v52 }
 0x623   :  { %v766_v55 = vmul.f32 %v764_v54, %v756_v52 }
 0x624   :  { %v757_v58 = vpop.f32.mrf.mxu1 }
 0x625   :  { %v768_v56 = vadd.f32 %v766_v55, %v756_v52  ;;  %v758_v20 = vadd.f32 %v757_v58, %v741_v50 }
 0x627   :  { %v763_v57 = vmul.f32 0.044715, %v758_v20  ;;  %v770_v59 = vmul.f32 0.7978846, %v768_v56  ;;  %v761_v7 = vmul.f32 0.5, %v758_v20 }
 0x629   :  { %v765_v60 = vmul.f32 %v763_v57, %v758_v20  ;;  %1941 = vtanh.f32 %v770_v59  ;;  %v1997_v59 = vld [vmem:[%s2592_s2] sm:$0xff] }
 0x62b   :  { %v767_v63 = vmul.f32 %v765_v60, %v758_v20  ;;  %v880_v60 = vperm.slane %v1997_v59, 6 }
 0x62d   :  { %v769_v0 = vadd.f32 %v767_v63, %v758_v20 }
 0x62f   :  { %v771_v1 = vmul.f32 0.7978846, %v769_v0  ;;  %v1942_v2 = vpop.eup %1941 }
 0x630   :  { %v774_v4 = vadd.f32 1.0, %v1942_v2 }
 0x631   :  { %1943 = vtanh.f32 %v771_v1 }
 0x632   :  { %v776_v10 = vmul.f32 %v774_v4, %v760_v6  ;;  %v883_v6 = vperm.slane %v1997_v59, 7 }
 0x637   :  { %v1944_v5 = vpop.eup %1943 }
 0x638   :  { %v775_v9 = vadd.f32 1.0, %v1944_v5 }
 0x63a   :  { %v777_v12 = vmul.f32 %v775_v9, %v761_v7 }
 0x63c   :  { %v786_v13 = vpack.c.bf16 %v777_v12, %v776_v10 }
 0x63e   :  { %1761 = vmatmul.msk.bf16.vlgmr.msra.gmra.mxu2 %vm812_vm3, %v786_v13  ;;  %v2356_v13 = vperm.slane %v2118_v61, 1 }
 0x6c1   :  { %v825_v16 = vpop.f32.mrf.mxu2 }
 0x6c2   :  { %v826_v17 = vadd.f32 %v825_v16, %v787_v15 }
 0x6c4   :  { %v830_v18 = vadd.f32 %v826_v17, %v717_v39 }
 0x6c6   :  { %v832_v19 = vsel %vm32_vm0, %v830_v18, 0.0  ;;  %v840_v21 = vmul.f32 %v830_v18, %v830_v18 }
 0x6c7   :  { %833 = vadd.xlane.f32.xlu2 %v832_v19 }
 0x6c8   :  { %v842_v8 = vsel %vm32_vm0, %v840_v21, 0.0 }
 0x6c9   :  { %v827_v22 = vpop.f32.mrf.mxu2  ;;  %843 = vadd.xlane.f32.xlu1 %v842_v8 }
 0x6ca   :  { %v828_v23 = vadd.f32 %v827_v22, %v787_v15 }
 0x6cc   :  { %v831_v3 = vadd.f32 %v828_v23, %v718_v40 }
 0x6ce   :  { %v835_v24 = vsel %vm32_vm0, %v831_v3, 0.0  ;;  %v841_v11 = vmul.f32 %v831_v3, %v831_v3 }
 0x6cf   :  { %836 = vadd.xlane.f32.xlu0 %v835_v24 }
 0x6d0   :  { %v845_v62 = vsel %vm32_vm0, %v841_v11, 0.0 }
 0x6d1   :  { %846 = vadd.xlane.f32.xlu2 %v845_v62 }
 0x73a   :  { %v834_v46 = vpop.xlane.xlu2 %833 }
 0x73b   :  { %v838_v26 = vmul.f32 %v834_v46, %v2075_v14 }
 0x73c   :  { %v844_v27 = vpop.xlane.xlu1 %843 }
 0x73d   :  { %v850_v25 = vmul.f32 %v838_v26, %v838_v26  ;;  %v848_v30 = vmul.f32 %v844_v27, %v2075_v14  ;;  %v854_v20 = vsub.f32 %v830_v18, %v838_v26 }
 0x73f   :  { %v852_v32 = vsub.f32 %v848_v30, %v850_v25 }
 0x741   :  { %v856_v37 = vadd.f32 1e-12, %v852_v32 }
 0x742   :  { %v837_v38 = vpop.xlane.xlu0 %836 }
 0x743   :  { %1945 = vrsqrt.f32 %v856_v37  ;;  %v839_v39 = vmul.f32 %v837_v38, %v2075_v14  ;;  %vm864_vm5 = vweird.f32 %v856_v37 }
 0x744   :  { %v847_v40 = vpop.xlane.xlu2 %846 }
 0x745   :  { %v851_v41 = vmul.f32 %v839_v39, %v839_v39  ;;  %v849_v43 = vmul.f32 %v847_v40, %v2075_v14  ;;  %v855_v1 = vsub.f32 %v831_v3, %v839_v39 }
 0x747   :  { %v853_v44 = vsub.f32 %v849_v43, %v851_v41 }
 0x749   :  { %v1946_v45 = vpop.eup %1945  ;;  %v857_v47 = vadd.f32 1e-12, %v853_v44 }
 0x74a   :  { %v859_v48 = vmul.f32 %v1946_v45, %v856_v37  ;;  %vm865_vm4 = vweird.f32 %v1946_v45 }
 0x74b   :  { %1947 = vrsqrt.f32 %v857_v47  ;;  %vm866_vm6 = vmor %vm864_vm5, %vm865_vm4  ;;  %vm874_vm12 = vweird.f32 %v857_v47 }
 0x74c   :  { %v860_v49 = vmul.f32 %v1946_v45, %v859_v48 }
 0x74e   :  { %v861_v50 = vmul.f32 0.5, %v860_v49 }
 0x750   :  { %v862_v51 = vsub.f32 1.5, %v861_v50 }
 0x751   :  { %v1948_v52 = vpop.eup %1947 }
 0x752   :  { %v863_v53 = vmul.f32 %v1946_v45, %v862_v51  ;;  %v869_v54 = vmul.f32 %v1948_v52, %v857_v47  ;;  %vm875_vm7 = vweird.f32 %v1948_v52 }
 0x753   :  { %vm876_vm13 = vmor %vm874_vm12, %vm875_vm7 }
 0x754   :  { %v870_v55 = vmul.f32 %v1948_v52, %v869_v54  ;;  %v867_v58 = vsel %vm866_vm6, %v1946_v45, %v863_v53 }
 0x755   :  { %v878_v63 = vmul.f32 %v867_v58, %v854_v20 }
 0x756   :  { %v871_v56 = vmul.f32 0.5, %v870_v55 }
 0x757   :  { %v881_v4 = vmul.f32 %v880_v60, %v878_v63 }
 0x758   :  { %v872_v57 = vsub.f32 1.5, %v871_v56 }
 0x759   :  { %v2348_v9 = vadd.f32 %v883_v6, %v881_v4 }
 0x75a   :  { %v873_v0 = vmul.f32 %v1948_v52, %v872_v57 }
 0x75c   :  { %v877_v2 = vsel %vm876_vm13, %v1948_v52, %v873_v0 }
 0x75d   :  { %v879_v5 = vmul.f32 %v877_v2, %v855_v1 }
 0x75f   :  { %v882_v7 = vmul.f32 %v880_v60, %v879_v5 }
 0x761   :  { %v2350_v10 = vadd.f32 %v883_v6, %v882_v7 }
 0x763   :  { %v891_v12 = vpack.c.bf16 %v2350_v10, %v2348_v9 }
 0x765   :  { %1774 = vmatmul.msk.bf16.vlgmr.msrb.gmra.mxu3 %vm32_vm0, %v891_v12 }
 0x7e8   :  { %v917_v15 = vpop.f32.mrf.mxu3 }
 0x7e9   :  { %v918_v16 = vadd.f32 %v917_v15, %v2356_v13 }
 0x7eb   :  { %v922_v17 = vpack.c.bf16 %v918_v16, %v918_v16 }
 0x7ed   :  { %v925_v18 = vunpack.c.l.b16 %v922_v17 }
 0x7ef   :  { %v2359_v19 = vpack.c.b16 %v925_v18, %v925_v18 }
 0x7f0   :  { %v919_v21 = vpop.f32.mrf.mxu3 }
 0x7f1   :  { %v920_v8 = vadd.f32 %v919_v21, %v2356_v13  ;;  %1160 = vrot.lane.b32.xlu1 %v2359_v19, %s2002_s18  ;;  %927 = vrot.lane.b32.xlu0 %v2359_v19, %s2001_s17 }
 0x7f3   :  { %v923_v22 = vpack.c.bf16 %v920_v8, %v920_v8 }
 0x7f5   :  { %v949_v23 = vunpack.c.l.b16 %v923_v22 }
 0x7f7   :  { %v2366_v61 = vpack.c.b16 %v949_v23, %v949_v23 }
 0x7f9   :  { %951 = vrot.lane.b32.xlu2 %v2366_v61, %s2001_s17  ;;  %1297 = vrot.lane.b32.xlu1 %v2366_v61, %s2006_s22 }
 0x7fa   :  { %1044 = vrot.lane.b32.xlu0 %v2359_v19, %s2000_s16 }
 0x801   :  { %1067 = vrot.lane.b32.xlu2 %v2366_v61, %s2000_s16 }
 0x802   :  { %1042 = vrot.lane.b32.xlu0 %v2359_v19, %s2005_s21 }
 0x809   :  { %1065 = vrot.lane.b32.xlu2 %v2366_v61, %s2005_s21 }
 0x80a   :  { %1183 = vrot.lane.b32.xlu0 %v2366_v61, %s2002_s18 }
 0x811   :  { %1158 = vrot.lane.b32.xlu2 %v2359_v19, %s2003_s19 }
 0x812   :  { %1181 = vrot.lane.b32.xlu0 %v2366_v61, %s2003_s19 }
 0x819   :  { %1276 = vrot.lane.b32.xlu2 %v2359_v19, %s2004_s20 }
 0x81a   :  { %1299 = vrot.lane.b32.xlu0 %v2366_v61, %s2004_s20 }
 0x821   :  { %1274 = vrot.lane.b32.xlu2 %v2359_v19, %s2006_s22 }
 0x829   :  { %1000 = vrot.lane.b32.xlu2 %v2359_v19, %s2007_s1 }
 0x853   :  { %v952_v3 = vpop.permute.xlu2 %951 }
 0x854   :  { %v957_v24 = vsel %vm139_vm8, %v952_v3, 0 }
 0x855   :  { %966 = vmatpush.bf16.xpose.msrb.mxu1 %v957_v24 }
 0x85b   :  { %v1068_v11 = vpop.permute.xlu2 %1067 }
 0x85c   :  { %v1073_v62 = vsel %vm139_vm8, %v1068_v11, 0  ;;  %1776 = vmatmul.msk.bf16.vlgmr.msrb.gmra.mxu1 %vm139_vm8, %v923_v22 }
 0x85d   :  { %1082 = vmatpush.bf16.xpose.msra.mxu1 %v1073_v62 }
 0x863   :  { %v1066_v46 = vpop.permute.xlu2 %1065  ;;  %v928_v26 = vpop.permute.xlu0 %927 }
 0x864   :  { %v933_v27 = vsel %vm139_vm8, %v928_v26, 0  ;;  %v1161_v28 = vpop.permute.xlu1 %1160 }
 0x865   :  { %942 = vmatpush.bf16.xpose.msrb.mxu0 %v933_v27  ;;  %v1166_v32 = vsel %vm139_vm8, %v1161_v28, 0 }
 0x86b   :  { %v1159_v29 = vpop.permute.xlu2 %1158 }
 0x86c   :  { %v1045_v25 = vpop.permute.xlu0 %1044  ;;  %1780 = vmatmul.msk.bf16.vlgmr.msra.gmra.mxu1 %vm139_vm8, %v1066_v46  ;;  %1775 = vmatmul.msk.bf16.vlgmr.msrb.gmra.mxu0 %vm139_vm8, %v922_v17  ;;  %v1298_v48 = vpop.permute.xlu1 %1297 }
 0x86d   :  { %v1050_v30 = vsel %vm139_vm8, %v1045_v25, 0 }
 0x86e   :  { %1059 = vmatpush.bf16.xpose.msra.mxu0 %v1050_v30 }
 0x873   :  { %v1277_v33 = vpop.permute.xlu2 %1276 }
 0x874   :  { %v1043_v34 = vpop.permute.xlu0 %1042  ;;  %v1282_v39 = vsel %vm139_vm8, %v1277_v33, 0 }
 0x876   :  { %1175 = vmatpush.bf16.xpose.msrb.mxu0 %v1166_v32 }
 0x87b   :  { %v1275_v37 = vpop.permute.xlu2 %1274 }
 0x87c   :  { %v1184_v38 = vpop.permute.xlu0 %1183  ;;  %1779 = vmatmul.msk.bf16.vlgmr.msra.gmra.mxu0 %vm139_vm8, %v1043_v34 }
 0x87d   :  { %v1189_v40 = vsel %vm139_vm8, %v1184_v38, 0 }
 0x87e   :  { %1291 = vmatpush.bf16.xpose.msra.mxu0 %v1282_v39  ;;  %1198 = vmatpush.bf16.xpose.msrb.mxu1 %v1189_v40 }
 0x883   :  { %v1001_v41 = vpop.permute.xlu2 %1000 }
 0x884   :  { %v1006_v43 = vsel %vm220_vm9, %v1001_v41, 0  ;;  %v1182_v44 = vpop.permute.xlu0 %1181 }
 0x885   :  { %1784 = vmatmul.msk.bf16.vlgmr.msrb.gmra.mxu1 %vm139_vm8, %v1182_v44  ;;  %1015 = vmatpush.bf16.msrb.mxu2 %v1006_v43 }
 0x88c   :  { %v1300_v45 = vpop.permute.xlu0 %1299  ;;  %1783 = vmatmul.msk.bf16.vlgmr.msrb.gmra.mxu0 %vm139_vm8, %v1159_v29 }
 0x88d   :  { %v1305_v47 = vsel %vm139_vm8, %v1300_v45, 0 }
 0x88e   :  { %1314 = vmatpush.bf16.xpose.msra.mxu1 %v1305_v47 }
 0x895   :  { %1788 = vmatmul.msk.bf16.vlgmr.msra.gmra.mxu1 %vm139_vm8, %v1298_v48 }
 0x89c   :  { %1787 = vmatmul.msk.bf16.vlgmr.msra.gmra.mxu0 %vm139_vm8, %v1275_v37 }
 0x8d9   :  { %v968_v49 = vpop.f32.mrf.mxu1 }
 0x8da   :  { %v973_v50 = vmul.f32 0.35355338, %v968_v49 }
 0x8dc   :  { %v975_v51 = vadd.f32 %v973_v50, %v2180_v42 }
 0x8de   :  { %v979_v52 = vsel %vm139_vm8, %v975_v51, -inf }
 0x8df   :  { %980 = vmax.xlane.f32.xlu2 %v979_v52 }
 0x8e1   :  { %v970_v53 = vpop.f32.mrf.mxu1 }
 0x8e9   :  { %v1084_v54 = vpop.f32.mrf.mxu1  ;;  %v944_v55 = vpop.f32.mrf.mxu0 }
 0x8ea   :  { %v972_v58 = vmul.f32 0.35355338, %v944_v55  ;;  %v1089_v20 = vmul.f32 0.35355338, %v1084_v54 }
 0x8ec   :  { %v974_v56 = vadd.f32 %v972_v58, %v2176_v35  ;;  %v1091_v63 = vadd.f32 %v1089_v20, %v2180_v42 }
 0x8ee   :  { %v976_v57 = vsel %vm139_vm8, %v974_v56, -inf  ;;  %v1095_v0 = vsel %vm139_vm8, %v1091_v63, -inf }
 0x8ef   :  { %977 = vmax.xlane.f32.xlu0 %v976_v57 }
 0x8f1   :  { %v1086_v59 = vpop.f32.mrf.mxu1  ;;  %v946_v60 = vpop.f32.mrf.mxu0 }
 0x8f7   :  { %1096 = vmax.xlane.f32.xlu0 %v1095_v0 }
 0x8f9   :  { %v1061_v1 = vpop.f32.mrf.mxu0 }
 0x8fa   :  { %v1088_v2 = vmul.f32 0.35355338, %v1061_v1 }
 0x8fc   :  { %v1090_v4 = vadd.f32 %v1088_v2, %v2176_v35 }
 0x8fe   :  { %v1092_v5 = vsel %vm139_vm8, %v1090_v4, -inf }
 0x8ff   :  { %1093 = vmax.xlane.f32.xlu1 %v1092_v5 }
 0x901   :  { %v1063_v6 = vpop.f32.mrf.mxu0 }
 0x902   :  { %v1200_v7 = vpop.f32.mrf.mxu1 }
 0x903   :  { %v1205_v12 = vmul.f32 0.35355338, %v1200_v7 }
 0x905   :  { %v1207_v15 = vadd.f32 %v1205_v12, %v2180_v42 }
 0x907   :  { %v1211_v16 = vsel %vm139_vm8, %v1207_v15, -inf }
 0x908   :  { %1212 = vmax.xlane.f32.xlu1 %v1211_v16 }
 0x909   :  { %v1177_v17 = vpop.f32.mrf.mxu0 }
 0x90a   :  { %v1202_v18 = vpop.f32.mrf.mxu1  ;;  %v1204_v21 = vmul.f32 0.35355338, %v1177_v17 }
 0x90b   :  { %1116 = vrot.lane.b32.xlu0 %v2359_v19, %s2008_s25 }
 0x90c   :  { %v1206_v8 = vadd.f32 %v1204_v21, %v2176_v35 }
 0x90e   :  { %v1208_v22 = vsel %vm139_vm8, %v1206_v8, -inf }
 0x90f   :  { %1209 = vmax.xlane.f32.xlu2 %v1208_v22 }
 0x911   :  { %v1179_v23 = vpop.f32.mrf.mxu0 }
 0x912   :  { %v1316_v3 = vpop.f32.mrf.mxu1 }
 0x913   :  { %v1321_v24 = vmul.f32 0.35355338, %v1316_v3 }
 0x915   :  { %v1323_v11 = vadd.f32 %v1321_v24, %v2180_v42 }
 0x917   :  { %v1327_v62 = vsel %vm139_vm8, %v1323_v11, -inf }
 0x918   :  { %1328 = vmax.xlane.f32.xlu2 %v1327_v62 }
 0x919   :  { %v1293_v46 = vpop.f32.mrf.mxu0 }
 0x91a   :  { %v1318_v26 = vpop.f32.mrf.mxu1  ;;  %v1320_v28 = vmul.f32 0.35355338, %v1293_v46 }
 0x91c   :  { %v2432_v29 = vadd.f32 %v1320_v28, %v2176_v35 }
 0x91e   :  { %v1324_v25 = vsel %vm139_vm8, %v2432_v29, -inf }
 0x921   :  { %1021 = vrot.lane.b32.xlu1 %v2366_v61, %s2007_s1  ;;  %v1295_v27 = vpop.f32.mrf.mxu0 }
 0x930   :  { %1137 = vrot.lane.b32.xlu2 %v2366_v61, %s2008_s25 }
 0x935   :  { %1325 = vmax.xlane.f32.xlu0 %v1324_v25 }
 0x949   :  { %1232 = vrot.lane.b32.xlu0 %v2359_v19, %s2009_s26 }
 0x952   :  { %v981_v42 = vpop.xlane.xlu2 %980 }
 0x953   :  { %v983_v30 = vsub.f32 %v975_v51, %v981_v42 }
 0x955   :  { %v986_v34 = vmul.f32 1.442695, %v983_v30 }
 0x962   :  { %v978_v32 = vpop.xlane.xlu0 %977 }
 0x963   :  { %v982_v33 = vsub.f32 %v974_v56, %v978_v32 }
 0x965   :  { %v984_v37 = vmul.f32 1.442695, %v982_v33 }
 0x967   :  { %1949 = vpow2.f32 %v984_v37 }
 0x968   :  { %1951 = vpow2.f32 %v986_v34 }
 0x96a   :  { %v1097_v40 = vpop.xlane.xlu0 %1096 }
 0x96b   :  { %v1099_v45 = vsub.f32 %v1091_v63, %v1097_v40 }
 0x96d   :  { %v2438_v38 = vpop.eup %1949  ;;  %v1102_v48 = vmul.f32 1.442695, %v1099_v45 }
 0x96e   :  { %v988_v35 = vsel %vm139_vm8, %v2438_v38, 0.0  ;;  %v2442_v39 = vpop.eup %1951 }
 0x96f   :  { %989 = vadd.xlane.f32.xlu1 %v988_v35  ;;  %v991_v43 = vsel %vm139_vm8, %v2442_v39, 0.0 }
 0x972   :  { %v1094_v41 = vpop.xlane.xlu1 %1093 }
 0x973   :  { %v1098_v44 = vsub.f32 %v1090_v4, %v1094_v41  ;;  %992 = vadd.xlane.f32.xlu0 %v991_v43 }
 0x975   :  { %v1100_v47 = vmul.f32 1.442695, %v1098_v44 }
 0x977   :  { %1953 = vpow2.f32 %v1100_v47 }
 0x978   :  { %1955 = vpow2.f32 %v1102_v48 }
 0x97b   :  { %v1213_v49 = vpop.xlane.xlu1 %1212 }
 0x97c   :  { %v1215_v50 = vsub.f32 %v1207_v15, %v1213_v49 }
 0x97d   :  { %v2446_v51 = vpop.eup %1953  ;;  %v1117_v53 = vpop.permute.xlu0 %1116 }
 0x97e   :  { %v1218_v52 = vmul.f32 1.442695, %v1215_v50  ;;  %v1122_v54 = vsel %vm220_vm9, %v1117_v53, 0  ;;  %v1104_v55 = vsel %vm139_vm8, %v2446_v51, 0.0  ;;  %v2451_v56 = vpop.eup %1955 }
 0x97f   :  { %1105 = vadd.xlane.f32.xlu0 %v1104_v55  ;;  %1131 = vmatpush.bf16.msra.mxu2 %v1122_v54  ;;  %v1107_v63 = vsel %vm139_vm8, %v2451_v56, 0.0 }
 0x980   :  { %1957 = vpow2.f32 %v1218_v52 }
 0x982   :  { %v1210_v58 = vpop.xlane.xlu2 %1209 }
 0x983   :  { %v1214_v20 = vsub.f32 %v1206_v8, %v1210_v58 }
 0x985   :  { %v1216_v59 = vmul.f32 1.442695, %v1214_v20 }
 0x986   :  { %v2453_v57 = vpop.eup %1957 }
 0x987   :  { %v1223_v60 = vsel %vm139_vm8, %v2453_v57, 0.0  ;;  %1959 = vpow2.f32 %v1216_v59  ;;  %1108 = vadd.xlane.f32.xlu0 %v1107_v63 }
 0x988   :  { %1224 = vadd.xlane.f32.xlu2 %v1223_v60 }
 0x98b   :  { %v1329_v0 = vpop.xlane.xlu2 %1328 }
 0x98c   :  { %v1331_v1 = vsub.f32 %v1323_v11, %v1329_v0 }
 0x98d   :  { %v1960_v2 = vpop.eup %1959 }
 0x98e   :  { %v1334_v4 = vmul.f32 1.442695, %v1331_v1  ;;  %v1220_v5 = vsel %vm139_vm8, %v1960_v2, 0.0 }
 0x98f   :  { %1221 = vadd.xlane.f32.xlu1 %v1220_v5 }
 0x990   :  { %1961 = vpow2.f32 %v1334_v4 }
 0x993   :  { %v1022_v6 = vpop.permute.xlu1 %1021  ;;  %v1138_v7 = vpop.permute.xlu2 %1137 }
 0x994   :  { %v1027_v12 = vsel %vm220_vm9, %v1022_v6, 0  ;;  %v1143_v15 = vsel %vm220_vm9, %v1138_v7, 0 }
 0x995   :  { %1036 = vmatpush.bf16.msra.mxu3 %v1027_v12 }
 0x996   :  { %v2462_v16 = vpop.eup %1961 }
 0x997   :  { %v1339_v17 = vsel %vm139_vm8, %v2462_v16, 0.0 }
 0x998   :  { %1340 = vadd.xlane.f32.xlu1 %v1339_v17 }
 0x999   :  { %1152 = vmatpush.bf16.msrb.mxu3 %v1143_v15 }
 0x99b   :  { %1253 = vrot.lane.b32.xlu0 %v2366_v61, %s2009_s26 }
 0x9a0   :  { %1348 = vrot.lane.b32.xlu2 %v2359_v19, %s2010_s27 }
 0x9a8   :  { %1424 = vrot.lane.b32.xlu2 %v2331_v31, %s2011_s0  ;;  %v1326_v18 = vpop.xlane.xlu0 %1325 }
 0x9a9   :  { %v1330_v21 = vsub.f32 %v2432_v29, %v1326_v18 }
 0x9ab   :  { %v1332_v8 = vmul.f32 1.442695, %v1330_v21 }
 0x9ad   :  { %1963 = vpow2.f32 %v1332_v8 }
 0x9b1   :  { %1369 = vrot.lane.b32.xlu1 %v2366_v61, %s2010_s27 }
 0x9b3   :  { %v1964_v22 = vpop.eup %1963 }
 0x9b4   :  { %v1336_v23 = vsel %vm139_vm8, %v1964_v22, 0.0 }
 0x9bb   :  { %v1233_v3 = vpop.permute.xlu0 %1232 }
 0x9bc   :  { %v1238_v61 = vsel %vm220_vm9, %v1233_v3, 0 }
 0x9c5   :  { %1337 = vadd.xlane.f32.xlu0 %v1336_v23 }
 0x9e2   :  { %v990_v24 = vpop.xlane.xlu1 %989 }
 0x9e3   :  { %1965 = vrcp.f32 %v990_v24 }
 0x9e6   :  { %v993_v11 = vpop.xlane.xlu0 %992 }
 0x9e7   :  { %1967 = vrcp.f32 %v993_v11 }
 0x9e9   :  { %v1966_v19 = vpop.eup %1965 }
 0x9ea   :  { %v996_v31 = vmul.f32 %v1966_v19, %v2438_v38 }
 0x9ec   :  { %v998_v62 = vpack.c.bf16 %v996_v31, %v996_v31 }
 0x9ed   :  { %v1968_v46 = vpop.eup %1967 }
 0x9ee   :  { %v997_v26 = vmul.f32 %v1968_v46, %v2442_v39  ;;  %1777 = vmatmul.msk.bf16.vlgmr.msrb.gmra.mxu2 %vm139_vm8, %v998_v62 }
 0x9ef   :  { %1247 = vmatpush.bf16.msrb.mxu2 %v1238_v61 }
 0x9f0   :  { %v999_v27 = vpack.c.bf16 %v997_v26, %v997_v26 }
 0x9f2   :  { %1778 = vmatmul.msk.bf16.vlgmr.msra.gmra.mxu3 %vm139_vm8, %v999_v27  ;;  %v1106_v28 = vpop.xlane.xlu0 %1105 }
 0x9f3   :  { %1969 = vrcp.f32 %v1106_v28 }
 0x9f9   :  { %v1970_v29 = vpop.eup %1969 }
 0x9fa   :  { %v1112_v25 = vmul.f32 %v1970_v29, %v2446_v51  ;;  %v1109_v30 = vpop.xlane.xlu0 %1108 }
 0x9fb   :  { %v1225_v42 = vpop.xlane.xlu2 %1224  ;;  %1971 = vrcp.f32 %v1109_v30 }
 0x9fc   :  { %v1114_v32 = vpack.c.bf16 %v1112_v25, %v1112_v25 }
 0x9fe   :  { %1781 = vmatmul.msk.bf16.vlgmr.msra.gmra.mxu2 %vm139_vm8, %v1114_v32 }
 0xa01   :  { %v1972_v33 = vpop.eup %1971 }
 0xa02   :  { %v1222_v37 = vpop.xlane.xlu1 %1221  ;;  %v1113_v38 = vmul.f32 %v1972_v33, %v2451_v56 }
 0xa03   :  { %v1349_v34 = vpop.permute.xlu2 %1348  ;;  %1973 = vrcp.f32 %v1222_v37 }
 0xa04   :  { %v1354_v35 = vsel %vm220_vm9, %v1349_v34, 0  ;;  %v1115_v39 = vpack.c.bf16 %v1113_v38, %v1113_v38  ;;  %1975 = vrcp.f32 %v1225_v42  ;;  %v2509_v34 = vld [vmem:[%s2592_s2 + $0x8] sm:$0x7f] }
 0xa05   :  { %1363 = vmatpush.bf16.msra.mxu2 %v1354_v35  ;;  %v1421_v37 = vperm.slane %v2509_v34, 0 }
 0xa06   :  { %1782 = vmatmul.msk.bf16.vlgmr.msrb.gmra.mxu3 %vm139_vm8, %v1115_v39 }
 0xa09   :  { %v1974_v40 = vpop.eup %1973 }
 0xa0a   :  { %v1228_v41 = vmul.f32 %v1974_v40, %v1960_v2  ;;  %v1976_v45 = vpop.eup %1975 }
 0xa0b   :  { %v1229_v48 = vmul.f32 %v1976_v45, %v2453_v57  ;;  %v1341_v50 = vpop.xlane.xlu1 %1340  ;;  %v1425_v3 = vpop.permute.xlu2 %1424 }
 0xa0c   :  { %v1230_v43 = vpack.c.bf16 %v1228_v41, %v1228_v41  ;;  %1977 = vrcp.f32 %v1341_v50  ;;  %1437 = vmatpush.bf16.msrb.mxu0 %v1425_v3 }
 0xa0d   :  { %v1254_v44 = vpop.permute.xlu0 %1253  ;;  %v1231_v49 = vpack.c.bf16 %v1229_v48, %v1229_v48 }
 0xa0e   :  { %v1259_v47 = vsel %vm220_vm9, %v1254_v44, 0  ;;  %1785 = vmatmul.msk.bf16.vlgmr.msrb.gmra.mxu2 %vm139_vm8, %v1230_v43 }
 0xa0f   :  { %1268 = vmatpush.bf16.msra.mxu3 %v1259_v47 }
 0xa12   :  { %v1978_v51 = vpop.eup %1977 }
 0xa13   :  { %v1345_v52 = vmul.f32 %v1978_v51, %v2462_v16 }
 0xa15   :  { %v1347_v55 = vpack.c.bf16 %v1345_v52, %v1345_v52 }
 0xa16   :  { %1786 = vmatmul.msk.bf16.vlgmr.msra.gmra.mxu3 %vm139_vm8, %v1231_v49 }
 0xa23   :  { %v1370_v53 = vpop.permute.xlu1 %1369 }
 0xa24   :  { %v1375_v54 = vsel %vm220_vm9, %v1370_v53, 0  ;;  %v1845_v53 = vld [vmem:[%s2591_s4 + $0x34] sm:$0xf] }
 0xa25   :  { %1384 = vmatpush.bf16.msrb.mxu3 %v1375_v54  ;;  %v1796_v54 = vld [vmem:[%s2591_s4 + $0x38] sm:$0xf0] }
 0xa28   :  { %1790 = vmatmul.msk.bf16.vlgmr.msrb.gmra.mxu3 %vm139_vm8, %v1347_v55 }
 0xa38   :  { %v1338_v58 = vpop.xlane.xlu0 %1337 }
 0xa39   :  { %1979 = vrcp.f32 %v1338_v58  ;;  %v1799_v58 = vor.u32 %v1845_v53, %v1796_v54 }
 0xa3b   :  { %1533 = vmatpush.bf16.msrb.mxu1 %v1799_v58 }
 0xa3f   :  { %v1980_v56 = vpop.eup %1979 }
 0xa40   :  { %v1344_v20 = vmul.f32 %v1980_v56, %v1964_v22 }
 0xa42   :  { %v1346_v57 = vpack.c.bf16 %v1344_v20, %v1344_v20  ;;  %v1843_v20 = vld [vmem:[%s2591_s4 + $0x24] sm:$0xf] }
 0xa44   :  { %1789 = vmatmul.msk.bf16.vlgmr.msra.gmra.mxu2 %vm139_vm8, %v1346_v57  ;;  %v1792_v57 = vld [vmem:[%s2591_s4 + $0x28] sm:$0xf0] }
 0xa71   :  { %v1017_v59 = vpop.f32.mrf.mxu2 }
 0xa75   :  { %v1038_v60 = vpop.f32.mrf.mxu3 }
 0xa79   :  { %v1019_v63 = vpop.f32.mrf.mxu2 }
 0xa7d   :  { %v1040_v0 = vpop.f32.mrf.mxu3 }
 0xa81   :  { %v1133_v1 = vpop.f32.mrf.mxu2 }
 0xa89   :  { %v1135_v2 = vpop.f32.mrf.mxu2  ;;  %v1154_v4 = vpop.f32.mrf.mxu3 }
 0xa8a   :  { %v1884_v5 = vpack.i.bf16 %v1154_v4, %v1133_v1 }
 0xa8c   :  { %1885 = vrot.lane.b32.xlu0 %v1884_v5, %s2012_s28  ;;  %v1506_v5 = vperm.slane %v2356_v13, 1 }
 0xa91   :  { %v1249_v6 = vpop.f32.mrf.mxu2  ;;  %v1156_v7 = vpop.f32.mrf.mxu3 }
 0xa99   :  { %v1251_v12 = vpop.f32.mrf.mxu2  ;;  %v1270_v15 = vpop.f32.mrf.mxu3 }
 0xa9a   :  { %v1889_v16 = vpack.i.bf16 %v1270_v15, %v1249_v6  ;;  %v1998_v6 = vld [vmem:[%s2593_s3] sm:$0xf] }
 0xa9b   :  { %v1503_v7 = vperm.slane %v1998_v6, 3 }
 0xa9c   :  { %1890 = vrot.lane.b32.xlu1 %v1889_v16, %s2013_s29 }
 0xa9d   :  { %v1507_v15 = vperm.slane %v1503_v7, 1 }
 0xaa1   :  { %v1272_v17 = vpop.f32.mrf.mxu3 }
 0xaa4   :  { %1422 = vrot.lane.b32.xlu1 %v2340_v36, %s2011_s0 }
 0xaab   :  { %v1386_v18 = vpop.f32.mrf.mxu3 }
 0xab3   :  { %v1388_v21 = vpop.f32.mrf.mxu3 }
 0xac7   :  { %v1365_v8 = vpop.f32.mrf.mxu2 }
 0xac8   :  { %v1894_v22 = vpack.i.bf16 %v1386_v18, %v1365_v8 }
 0xaca   :  { %1895 = vrot.lane.b32.xlu2 %v1894_v22, %s2014_s30 }
 0xacf   :  { %v1367_v23 = vpop.f32.mrf.mxu2 }
 0xafe   :  { %v1886_v19 = vpop.permute.xlu0 %1885 }
 0xaff   :  { %v1888_v31 = vunpack.i.h.bf16 %v1886_v19  ;;  %v1887_v62 = vunpack.i.l.bf16 %v1886_v19 }
 0xb01   :  { %v1415_v36 = vsel %vm139_vm8, %v1038_v60, %v1888_v31  ;;  %v1414_v27 = vsel %vm139_vm8, %v1017_v59, %v1887_v62  ;;  %v1795_v59 = vor.u32 %v1843_v20, %v1792_v57 }
 0xb03   :  { %1534 = vmatpush.bf16.msrb.mxu1 %v1795_v59 }
 0xb0e   :  { %v1891_v24 = vpop.permute.xlu1 %1890 }
 0xb0f   :  { %v1893_v46 = vunpack.i.h.bf16 %v1891_v24  ;;  %v1892_v61 = vunpack.i.l.bf16 %v1891_v24 }
 0xb11   :  { %v1416_v25 = vsel %vm632_vm10, %v1414_v27, %v1892_v61  ;;  %v1417_v42 = vsel %vm632_vm10, %v1415_v36, %v1893_v46  ;;  %v1495_v46 = vperm.slane %v2509_v34, 1 }
 0xb16   :  { %v1423_v11 = vpop.permute.xlu1 %1422 }
 0xb17   :  { %1438 = vmatpush.bf16.msrb.mxu0 %v1423_v11 }
 0xb24   :  { %v1896_v26 = vpop.permute.xlu2 %1895 }
 0xb25   :  { %v1898_v28 = vunpack.i.h.bf16 %v1896_v26  ;;  %v1897_v29 = vunpack.i.l.bf16 %v1896_v26 }
 0xb27   :  { %v1418_v30 = vsel %vm635_vm11, %v1416_v25, %v1897_v29  ;;  %v1419_v32 = vsel %vm635_vm11, %v1417_v42, %v1898_v28  ;;  %v1498_v25 = vperm.slane %v2509_v34, 2 }
 0xb28   :  { %v1420_v33 = vpack.c.bf16 %v1419_v32, %v1418_v30 }
 0xb2a   :  { %1791 = vmatmul.msk.bf16.vlgmr.msrb.gmra.mxu0 %vm32_vm0, %v1420_v33 }
 0xba7   :  { %v1440_v38 = vpop.f32.mrf.mxu0 }
 0xba8   :  { %v1441_v35 = vadd.f32 %v1440_v38, %v1421_v37  ;;  %v1849_v38 = vld [vmem:[%s2595_s5 + $0x30] sm:$0xff] }
 0xbaa   :  { %v2513_v39 = vadd.f32 %v1441_v35, %v2348_v9  ;;  %v1848_v35 = vld [vmem:[%s2595_s5 + $0x28] sm:$0xff] }
 0xbac   :  { %v1447_v40 = vsel %vm32_vm0, %v2513_v39, 0.0  ;;  %v1455_v41 = vmul.f32 %v2513_v39, %v2513_v39 }
 0xbad   :  { %1448 = vadd.xlane.f32.xlu2 %v1447_v40 }
 0xbae   :  { %v1457_v43 = vsel %vm32_vm0, %v1455_v41, 0.0  ;;  %v1847_v41 = vld [vmem:[%s2595_s5 + $0x20] sm:$0xff] }
 0xbaf   :  { %v1442_v44 = vpop.f32.mrf.mxu0  ;;  %1458 = vadd.xlane.f32.xlu1 %v1457_v43 }
 0xbb0   :  { %v1443_v45 = vadd.f32 %v1442_v44, %v1421_v37  ;;  %v1850_v37 = vld [vmem:[%s2595_s5 + $0x38] sm:$0xff] }
 0xbb1   :  { %1601 = vmatpush.bf16.msrb.mxu2 %v1850_v37 }
 0xbb2   :  { %v1446_v47 = vadd.f32 %v1443_v45, %v2350_v10 }
 0xbb4   :  { %v1450_v48 = vsel %vm32_vm0, %v1446_v47, 0.0  ;;  %v1456_v49 = vmul.f32 %v1446_v47, %v1446_v47 }
 0xbb5   :  { %1451 = vadd.xlane.f32.xlu0 %v1450_v48  ;;  %1602 = vmatpush.bf16.msrb.mxu2 %v1849_v38 }
 0xbb6   :  { %v1460_v9 = vsel %vm32_vm0, %v1456_v49, 0.0 }
 0xbb7   :  { %1461 = vadd.xlane.f32.xlu2 %v1460_v9 }
 0xbb9   :  { %1603 = vmatpush.bf16.msrb.mxu2 %v1848_v35 }
 0xbbd   :  { %1604 = vmatpush.bf16.msrb.mxu2 %v1847_v41 }
 0xbc8   :  { %1520 = vrot.lane.b32.xlu1 %v1507_v15, %s2011_s0 }
 0xbc9   :  { %1518 = vrot.lane.b32.xlu0 %v1506_v5, %s2011_s0 }
 0xc20   :  { %v1449_v50 = vpop.xlane.xlu2 %1448 }
 0xc21   :  { %v1453_v51 = vmul.f32 %v1449_v50, %v2075_v14 }
 0xc22   :  { %v1459_v52 = vpop.xlane.xlu1 %1458 }
 0xc23   :  { %v1465_v10 = vmul.f32 %v1453_v51, %v1453_v51  ;;  %v1463_v55 = vmul.f32 %v1459_v52, %v2075_v14  ;;  %v1469_v31 = vsub.f32 %v2513_v39, %v1453_v51 }
 0xc25   :  { %v1467_v56 = vsub.f32 %v1463_v55, %v1465_v10 }
 0xc27   :  { %v1471_v60 = vadd.f32 1e-12, %v1467_v56 }
 0xc28   :  { %v1452_v63 = vpop.xlane.xlu0 %1451 }
 0xc29   :  { %1981 = vrsqrt.f32 %v1471_v60  ;;  %v1454_v0 = vmul.f32 %v1452_v63, %v2075_v14  ;;  %vm1479_vm9 = vweird.f32 %v1471_v60 }
 0xc2a   :  { %v1462_v1 = vpop.xlane.xlu2 %1461 }
 0xc2b   :  { %v1466_v2 = vmul.f32 %v1454_v0, %v1454_v0  ;;  %v1464_v4 = vmul.f32 %v1462_v1, %v2075_v14  ;;  %v1470_v36 = vsub.f32 %v1446_v47, %v1454_v0 }
 0xc2d   :  { %v1468_v12 = vsub.f32 %v1464_v4, %v1466_v2  ;;  %v1569_v4 = vperm.slane %v2509_v34, 3 }
 0xc2f   :  { %v1982_v16 = vpop.eup %1981  ;;  %v1472_v17 = vadd.f32 1e-12, %v1468_v12 }
 0xc30   :  { %v1474_v18 = vmul.f32 %v1982_v16, %v1471_v60  ;;  %vm1480_vm8 = vweird.f32 %v1982_v16 }
 0xc31   :  { %1983 = vrsqrt.f32 %v1472_v17  ;;  %vm1481_vm11 = vmor %vm1479_vm9, %vm1480_vm8  ;;  %vm1489_vm15 = vweird.f32 %v1472_v17 }
 0xc32   :  { %v1475_v21 = vmul.f32 %v1982_v16, %v1474_v18 }
 0xc34   :  { %v1476_v8 = vmul.f32 0.5, %v1475_v21 }
 0xc36   :  { %v1477_v22 = vsub.f32 1.5, %v1476_v8 }
 0xc37   :  { %v1984_v23 = vpop.eup %1983 }
 0xc38   :  { %v1478_v13 = vmul.f32 %v1982_v16, %v1477_v22  ;;  %v1484_v3 = vmul.f32 %v1984_v23, %v1472_v17  ;;  %vm1490_vm14 = vweird.f32 %v1984_v23 }
 0xc39   :  { %vm1491_vm1 = vmor %vm1489_vm15, %vm1490_vm14 }
 0xc3a   :  { %v1485_v24 = vmul.f32 %v1984_v23, %v1484_v3  ;;  %v1482_v11 = vsel %vm1481_vm11, %v1982_v16, %v1478_v13  ;;  %v1521_v40 = vpop.permute.xlu1 %1520 }
 0xc3b   :  { %v1493_v61 = vmul.f32 %v1482_v11, %v1469_v31  ;;  %v1519_v39 = vpop.permute.xlu0 %1518  ;;  %v1852_v11 = vld [vmem:[%s2596_s6 + $0x8] sm:$0xff] }
 0xc3c   :  { %v1486_v19 = vmul.f32 0.5, %v1485_v24  ;;  %v1522_v43 = vsel %vm32_vm0, %v1519_v39, %v1521_v40  ;;  %1694 = vmatpush.bf16.msra.mxu3 %v1852_v11 }
 0xc3d   :  { %v1496_v28 = vmul.f32 %v1495_v46, %v1493_v61 }
 0xc3e   :  { %v1487_v62 = vsub.f32 1.5, %v1486_v19 }
 0xc3f   :  { %v1499_v30 = vadd.f32 %v1498_v25, %v1496_v28 }
 0xc40   :  { %v1488_v26 = vmul.f32 %v1984_v23, %v1487_v62 }
 0xc42   :  { %v1492_v27 = vsel %vm1491_vm1, %v1984_v23, %v1488_v26 }
 0xc43   :  { %v1494_v29 = vmul.f32 %v1492_v27, %v1470_v36 }
 0xc45   :  { %v1497_v42 = vmul.f32 %v1495_v46, %v1494_v29  ;;  %v1851_v46 = vld [vmem:[%s2596_s6] sm:$0xff] }
 0xc46   :  { %1695 = vmatpush.bf16.msra.mxu3 %v1851_v46 }
 0xc47   :  { %v1500_v32 = vadd.f32 %v1498_v25, %v1497_v42 }
 0xc49   :  { %v1501_v33 = vpack.c.bf16 %v1500_v32, %v1499_v30 }
 0xc4b   :  { %1800 = vmatmul.msk.bf16.vlgmr.msrb.gmra.mxu1 %vm32_vm0, %v1501_v33 }
 0xcc8   :  { %v1536_v44 = vpop.f32.mrf.mxu1 }
 0xcc9   :  { %v1537_v45 = vadd.f32 %v1536_v44, %v1522_v43 }
 0xccb   :  { %v1543_v47 = vmul.f32 0.044715, %v1537_v45  ;;  %v1541_v59 = vmul.f32 0.5, %v1537_v45 }
 0xccd   :  { %v1545_v48 = vmul.f32 %v1543_v47, %v1537_v45 }
 0xccf   :  { %v1547_v49 = vmul.f32 %v1545_v48, %v1537_v45 }
 0xcd0   :  { %v1538_v9 = vpop.f32.mrf.mxu1 }
 0xcd1   :  { %v1549_v50 = vadd.f32 %v1547_v49, %v1537_v45  ;;  %v1539_v51 = vadd.f32 %v1538_v9, %v1522_v43 }
 0xcd3   :  { %v1544_v52 = vmul.f32 0.044715, %v1539_v51  ;;  %v1551_v53 = vmul.f32 0.7978846, %v1549_v50  ;;  %v1542_v60 = vmul.f32 0.5, %v1539_v51 }
 0xcd5   :  { %v1546_v54 = vmul.f32 %v1544_v52, %v1539_v51  ;;  %1985 = vtanh.f32 %v1551_v53  ;;  %v1664_v53 = vperm.slane %v2509_v34, 5 }
 0xcd7   :  { %v1548_v10 = vmul.f32 %v1546_v54, %v1539_v51 }
 0xcd9   :  { %v1550_v55 = vadd.f32 %v1548_v10, %v1539_v51 }
 0xcdb   :  { %v1552_v58 = vmul.f32 0.7978846, %v1550_v55  ;;  %v1986_v56 = vpop.eup %1985 }
 0xcdc   :  { %v1555_v20 = vadd.f32 1.0, %v1986_v56  ;;  %v1672_v56 = vperm.slane %v2509_v34, 6 }
 0xcdd   :  { %1987 = vtanh.f32 %v1552_v58 }
 0xcde   :  { %v1557_v0 = vmul.f32 %v1555_v20, %v1541_v59 }
 0xce3   :  { %v1988_v57 = vpop.eup %1987 }
 0xce4   :  { %v1556_v63 = vadd.f32 1.0, %v1988_v57 }
 0xce6   :  { %v1558_v1 = vmul.f32 %v1556_v63, %v1542_v60 }
 0xce8   :  { %v1568_v2 = vpack.c.bf16 %v1558_v1, %v1557_v0 }
 0xcea   :  { %1825 = vmatmul.msk.bf16.vlgmr.msrb.gmra.mxu2 %vm812_vm3, %v1568_v2 }
 0xd6d   :  { %v1606_v5 = vpop.f32.mrf.mxu2 }
 0xd6e   :  { %v1607_v6 = vadd.f32 %v1606_v5, %v1569_v4 }
 0xd70   :  { %v1611_v7 = vadd.f32 %v1607_v6, %v1499_v30 }
 0xd72   :  { %v1613_v12 = vsel %vm32_vm0, %v1611_v7, 0.0  ;;  %v1621_v22 = vmul.f32 %v1611_v7, %v1611_v7 }
 0xd73   :  { %1614 = vadd.xlane.f32.xlu2 %v1613_v12 }
 0xd74   :  { %v1623_v23 = vsel %vm32_vm0, %v1621_v22, 0.0 }
 0xd75   :  { %v1608_v15 = vpop.f32.mrf.mxu2 }
 0xd76   :  { %v1609_v16 = vadd.f32 %v1608_v15, %v1569_v4 }
 0xd78   :  { %v1612_v17 = vadd.f32 %v1609_v16, %v1500_v32 }
 0xd7a   :  { %v1616_v18 = vsel %vm32_vm0, %v1612_v17, 0.0  ;;  %v1622_v21 = vmul.f32 %v1612_v17, %v1612_v17 }
 0xd7b   :  { %1617 = vadd.xlane.f32.xlu2 %v1616_v18 }
 0xd7c   :  { %v1626_v8 = vsel %vm32_vm0, %v1622_v21, 0.0 }
 0xd7d   :  { %1627 = vadd.xlane.f32.xlu0 %v1626_v8 }
 0xd83   :  { %1624 = vadd.xlane.f32.xlu2 %v1623_v23 }
 0xde6   :  { %v1615_v13 = vpop.xlane.xlu2 %1614 }
 0xde7   :  { %v1619_v61 = vmul.f32 %v1615_v13, %v2075_v14 }
 0xde9   :  { %v1631_v28 = vmul.f32 %v1619_v61, %v1619_v61  ;;  %v1635_v9 = vsub.f32 %v1611_v7, %v1619_v61 }
 0xdee   :  { %v1618_v3 = vpop.xlane.xlu2 %1617 }
 0xdef   :  { %v1620_v24 = vmul.f32 %v1618_v3, %v2075_v14 }
 0xdf0   :  { %v1628_v19 = vpop.xlane.xlu0 %1627 }
 0xdf1   :  { %v1632_v31 = vmul.f32 %v1620_v24, %v1620_v24  ;;  %v1630_v62 = vmul.f32 %v1628_v19, %v2075_v14  ;;  %v1636_v45 = vsub.f32 %v1612_v17, %v1620_v24 }
 0xdf3   :  { %v1634_v26 = vsub.f32 %v1630_v62, %v1632_v31 }
 0xdf5   :  { %v1638_v36 = vadd.f32 1e-12, %v1634_v26 }
 0xdf6   :  { %v1625_v27 = vpop.xlane.xlu2 %1624 }
 0xdf7   :  { %1989 = vrsqrt.f32 %v1638_v36  ;;  %v1629_v29 = vmul.f32 %v1625_v27, %v2075_v14  ;;  %vm1655_vm3 = vweird.f32 %v1638_v36  ;;  %v1661_v14 = vperm.slane %v2509_v34, 4 }
 0xdf9   :  { %v1633_v25 = vsub.f32 %v1629_v29, %v1631_v28 }
 0xdfb   :  { %v1637_v42 = vadd.f32 1e-12, %v1633_v25 }
 0xdfd   :  { %v1990_v30 = vpop.eup %1989  ;;  %1991 = vrsqrt.f32 %v1637_v42  ;;  %vm1645_vm6 = vweird.f32 %v1637_v42 }
 0xdfe   :  { %v1650_v32 = vmul.f32 %v1990_v30, %v1638_v36  ;;  %vm1656_vm2 = vweird.f32 %v1990_v30 }
 0xdff   :  { %vm1657_vm4 = vmor %vm1655_vm3, %vm1656_vm2 }
 0xe00   :  { %v1651_v33 = vmul.f32 %v1990_v30, %v1650_v32 }
 0xe02   :  { %v1652_v37 = vmul.f32 0.5, %v1651_v33 }
 0xe03   :  { %v1992_v38 = vpop.eup %1991 }
 0xe04   :  { %v1653_v35 = vsub.f32 1.5, %v1652_v37  ;;  %v1640_v39 = vmul.f32 %v1992_v38, %v1637_v42  ;;  %vm1646_vm5 = vweird.f32 %v1992_v38 }
 0xe05   :  { %vm1647_vm7 = vmor %vm1645_vm6, %vm1646_vm5 }
 0xe06   :  { %v1654_v40 = vmul.f32 %v1990_v30, %v1653_v35  ;;  %v1641_v41 = vmul.f32 %v1992_v38, %v1640_v39 }
 0xe08   :  { %v1658_v43 = vsel %vm1657_vm4, %v1990_v30, %v1654_v40  ;;  %v1642_v44 = vmul.f32 0.5, %v1641_v41 }
 0xe09   :  { %v1660_v48 = vmul.f32 %v1658_v43, %v1636_v45 }
 0xe0a   :  { %v1643_v47 = vsub.f32 1.5, %v1642_v44 }
 0xe0b   :  { %v1663_v51 = vmul.f32 %v1661_v14, %v1660_v48 }
 0xe0c   :  { %v1644_v49 = vmul.f32 %v1992_v38, %v1643_v47 }
 0xe0d   :  { %v1666_v55 = vadd.f32 %v1664_v53, %v1663_v51 }
 0xe0e   :  { %v1648_v50 = vsel %vm1647_vm7, %v1992_v38, %v1644_v49 }
 0xe0f   :  { %v1659_v52 = vmul.f32 %v1648_v50, %v1635_v9 }
 0xe11   :  { %v1662_v54 = vmul.f32 %v1661_v14, %v1659_v52 }
 0xe13   :  { %v1665_v10 = vadd.f32 %v1664_v53, %v1662_v54 }
 0xe15   :  { %v1671_v58 = vpack.c.bf16 %v1666_v55, %v1665_v10 }
 0xe17   :  { %1834 = vmatmul.msk.bf16.vlgmr.msra.gmra.mxu3 %vm32_vm0, %v1671_v58 }
 0xe9a   :  { %v1697_v20 = vpop.f32.mrf.mxu3 }
 0xe9b   :  { %v1698_v57 = vadd.f32 %v1697_v20, %v1672_v56 }
 0xe9d   :  { %1993 = vtanh.f32 %v1698_v57 }
 0xea2   :  { %v1699_v59 = vpop.f32.mrf.mxu3 }
 0xea3   :  { %v1994_v60 = vpop.eup %1993  ;;  %v1700_v63 = vadd.f32 %v1699_v59, %v1672_v56 }
 0xea4   :  { %1704 = vst.msk [vmem:[%s2597_s7] sm:$0xff] %vm632_vm10, %v1994_v60 }
 0xea5   :  { %1995 = vtanh.f32 %v1700_v63 }
 0xeab   :  { %v1996_v0 = vpop.eup %1995 }
 0xeac   :  { %1705 = vst.msk [vmem:[%s2597_s7 + $0x8] sm:$0xff] %vm632_vm10, %v1996_v0 }

</bundles_post_ra>
